<compile_context>
chip_gen: v6e
topology: v6e:2x2x1
jax: 0.10.0
libtpu: 0.0.40
codegen_flags: <defaults>
</compile_context>

<pallas_src>
import functools
import math

import jax
import jax.numpy as jnp
from jax import lax
from jax.experimental import pallas as pl
from jax.experimental.pallas import tpu as pltpu


_GATE_PERM = (0, 1, 3, 2)   # PyTorch [i, f, g, o] -> kernel [i, f, o, g]


def _round_up(x, m):
    return ((x + m - 1) // m) * m


def _bytes(shape, dtype):
    return math.prod(shape) * jnp.dtype(dtype).itemsize


@functools.lru_cache(maxsize=1)
def _tpu_caps():
    """Best-effort (vmem_cap_bytes, tensorcores_per_chip, default_t_block)."""
    kind = ""
    try:
        kind = jax.devices()[0].device_kind.lower()
    except Exception:
        pass
    is_v7 = ("v7" in kind) or ("7x" in kind)
    phys_vmem = (64 if is_v7 else 128) * 1024 * 1024
    try:
        phys_vmem = int(pltpu.get_tpu_info().vmem_capacity_bytes)
    except Exception:
        pass
    # Leave ~18% of physical VMEM for compiler-internal scratch
    # (v7x: 64 MiB -> ~52 MiB cap; v5e/v6e: 128 MiB -> ~104 MiB cap).
    vmem_cap = (phys_vmem * 13) // 16
    n_cores = 2 if is_v7 else 1
    default_t_block = 16 if is_v7 else 32
    return vmem_cap, n_cores, default_t_block


def _lstm_recurrent_kernel(preact_ref, h0_ref, c0_ref, whh_ref,
                           hseq_ref, hout_ref, cout_ref,
                           h_sc, c_sc, *, seq_len, t_block, hp,
                           needs_mask, unroll):
    """Runs t_block LSTM steps per grid iteration.

    preact_ref: (t_block, Bb, 4*Hp) mm   precomputed x@W_ih + bias, gate order [i,f,o,g]
    whh_ref:    (Hp, 4*Hp) mm            recurrent weight (gate-blocked, single-buffered)
    hseq_ref:   (t_block, Bb, Hp) f32    per-step hidden output slab
    hout/cout:  (1, Bb, Hp) f32          final states (written on last block only)
    h_sc:       (Bb, Hp) mm              recurrent hidden state (matmul dtype)
    c_sc:       (Bb, Hp) f32             recurrent cell state
    """
    t_grid = pl.program_id(1)
    n_t = pl.num_programs(1)

    # Initialize recurrent state at the start of each sequence (per batch block).
    @pl.when(t_grid == 0)
    def _init():
        h_sc[...] = h0_ref[0].astype(h_sc.dtype)
        c_sc[...] = c0_ref[0]

    w_hh = whh_ref[...]                      # (Hp, 4Hp), matmul dtype

    def gate_math(gates, c_prev):
        # gates: (Bb, 4Hp) f32 in [i, f, o, g] order -> one wide sigmoid + one tanh.
        ifo = jax.nn.sigmoid(gates[:, :3 * hp])
        g_g = jnp.tanh(gates[:, 3 * hp:])
        i_g = ifo[:, 0 * hp:1 * hp]
        f_g = ifo[:, 1 * hp:2 * hp]
        o_g = ifo[:, 2 * hp:3 * hp]
        c_new = f_g * c_prev + i_g * g_g
        h_new = o_g * jnp.tanh(c_new)
        return h_new, c_new

    # Steady-state path: no padding mask, h carried in matmul dtype so the
    # cast sits next to the store, not on the h -> matmul critical chain.
    def steady_step(i, carry):
        h_mm, c_prev = carry
        gates = preact_ref[i].astype(jnp.float32) + jnp.dot(
            h_mm, w_hh, preferred_element_type=jnp.float32)
        h_new, c_new = gate_math(gates, c_prev)
        hseq_ref[i] = h_new.astype(hseq_ref.dtype)
        return h_new.astype(w_hh.dtype), c_new

    def run_steady():
        h_fin, c_fin = lax.fori_loop(0, t_block, steady_step,
                                     (h_sc[...], c_sc[...]), unroll=unroll)
        h_sc[...] = h_fin
        c_sc[...] = c_fin

    # Tail path: only the last sequence block can contain padded steps.
    def masked_step(i, carry):
        h_prev, c_prev = carry
        gates = preact_ref[i].astype(jnp.float32) + jnp.dot(
            h_prev.astype(w_hh.dtype), w_hh, preferred_element_type=jnp.float32)
        h_new, c_new = gate_math(gates, c_prev)
        valid = (t_grid * t_block + i) < seq_len
        h_new = jnp.where(valid, h_new, h_prev)
        c_new = jnp.where(valid, c_new, c_prev)
        hseq_ref[i] = h_new.astype(hseq_ref.dtype)
        return h_new, c_new

    def run_masked():
        h_fin, c_fin = lax.fori_loop(
            0, t_block, masked_step,
            (h_sc[...].astype(jnp.float32), c_sc[...]), unroll=unroll)
        h_sc[...] = h_fin.astype(h_sc.dtype)
        c_sc[...] = c_fin

    if needs_mask:
        @pl.when(t_grid < n_t - 1)
        def _steady():
            run_steady()

        @pl.when(t_grid == n_t - 1)
        def _tail():
            run_masked()
    else:
        run_steady()

    # Final-state outputs written once, on the last sequence block.
    @pl.when(t_grid == n_t - 1)
    def _finalize():
        hout_ref[0] = h_sc[...].astype(hout_ref.dtype)
        cout_ref[0] = c_sc[...]


@functools.partial(jax.jit, static_argnames=("t_block", "matmul_dtype"))
def lstm_forward(x, params, h=None, c=None, *, t_block=None,
                 matmul_dtype=jnp.bfloat16):
    """Single-layer LSTM forward.

    x: (seq_len, batch, input_size)
    h, c: (1, batch, hidden_size) or None
    Returns: h_seq (seq_len, batch, hidden_size), (h, c) final states.
    """
    w_ih, w_hh, b = params          # (I, 4H), (H, 4H), (1, 4H), gate order [i,f,g,o]
    seq_len, B, I = x.shape
    H = w_hh.shape[0]
    mm = jnp.dtype(matmul_dtype)

    if h is None:
        h = jnp.zeros((1, B, H), jnp.float32)
    if c is None:
        c = jnp.zeros((1, B, H), jnp.float32)

    vmem_cap, n_cores, default_tb = _tpu_caps()

    # ---- hardware-aligned padded sizes -------------------------------------
    Hp = _round_up(H, 128)                      # lane-aligned hidden
    Bp = _round_up(B, 8)                        # sublane-aligned batch
    if n_cores >= 2 and Bp >= 16:
        # Split the batch only on 2-TensorCore chips (v7x); on 1-TC chips a
        # split is pure overhead (serial outer loop + smaller matmul M).
        b_block = _round_up(-(-Bp // n_cores), 8)
        Bp = _round_up(Bp, b_block)
    else:
        b_block = Bp
    n_b = Bp // b_block

    if t_block is None:
        t_block = default_tb
    t_block = max(1, min(int(t_block), seq_len))

    def resident_bytes(tb):
        return (2 * _bytes((tb, b_block, 4 * Hp), mm)          # preact (dbl buf)
                + 2 * _bytes((tb, b_block, Hp), jnp.float32)   # h_seq  (dbl buf)
                + 1 * _bytes((Hp, 4 * Hp), mm)                 # W_hh (single buf)
                + 8 * _bytes((1, b_block, Hp), jnp.float32)    # h0,c0,hout,cout
                + _bytes((b_block, Hp), mm)                    # h scratch
                + _bytes((b_block, Hp), jnp.float32))          # c scratch

    # Shrink t_block if the resident estimate would not fit the VMEM cap.
    while t_block > 1 and 10 * resident_bytes(t_block) > 9 * vmem_cap:
        t_block //= 2

    seq_pad = _round_up(seq_len, t_block)
    n_t = seq_pad // t_block
    needs_mask = seq_pad != seq_len

    resident = resident_bytes(t_block)
    vmem_limit = int(min(max(resident + resident // 2, 16 * 1024 * 1024),
                         vmem_cap))

    perm = list(_GATE_PERM)

    # ---- gate-reordered, gate-blocked, lane-padded weights / bias ----------
    # Padding W_ih / x / bias *before* the projection matmul makes XLA emit
    # the padded gate-blocked preactivation tensor directly (no extra
    # zeros + dynamic-update-slice pass over the largest array).
    w_ih_p = jnp.pad(w_ih.reshape(I, 4, H)[:, perm, :],
                     ((0, 0), (0, 0), (0, Hp - H))).reshape(I, 4 * Hp)
    w_hh_p = jnp.pad(w_hh.reshape(H, 4, H)[:, perm, :],
                     ((0, Hp - H), (0, 0), (0, Hp - H))).reshape(Hp, 4 * Hp)
    b_p = jnp.pad(b.reshape(4, H)[perm, :].astype(jnp.float32),
                  ((0, 0), (0, Hp - H))).reshape(1, 4 * Hp)

    # ---- hoisted input projection: one big matmul over the whole sequence --
    x_p = jnp.pad(x.astype(jnp.float32),
                  ((0, seq_pad - seq_len), (0, Bp - B), (0, 0)))
    preact = jnp.dot(x_p.reshape(seq_pad * Bp, I).astype(mm),
                     w_ih_p.astype(mm),
                     preferred_element_type=jnp.float32) + b_p       # f32
    preact_p = preact.astype(mm).reshape(seq_pad, Bp, 4 * Hp)        # store in mm

    whh_p = w_hh_p.astype(mm)
    h0_p = jnp.pad(h.astype(jnp.float32), ((0, 0), (0, Bp - B), (0, Hp - H)))
    c0_p = jnp.pad(c.astype(jnp.float32), ((0, 0), (0, Bp - B), (0, Hp - H)))

    out_shapes = (
        jax.ShapeDtypeStruct((seq_pad, Bp, Hp), jnp.float32),   # h_seq (padded)
        jax.ShapeDtypeStruct((1, Bp, Hp), jnp.float32),         # final h (padded)
        jax.ShapeDtypeStruct((1, Bp, Hp), jnp.float32),         # final c (padded)
    )

    grid_spec = pltpu.PrefetchScalarGridSpec(
        num_scalar_prefetch=0,
        grid=(n_b, n_t),
        in_specs=[
            pl.BlockSpec((t_block, b_block, 4 * Hp), lambda bi, ti: (ti, bi, 0)),
            pl.BlockSpec((1, b_block, Hp), lambda bi, ti: (0, bi, 0)),   # h0
            pl.BlockSpec((1, b_block, Hp), lambda bi, ti: (0, bi, 0)),   # c0
            # Recurrent weight: constant index_map -> single-buffer it so it
            # doesn't burn 2x VMEM (critical for large H on v7x's 64 MiB).
            pl.BlockSpec((Hp, 4 * Hp), lambda bi, ti: (0, 0),
                         pipeline_mode=pl.Buffered(buffer_count=1)),
        ],
        out_specs=[
            pl.BlockSpec((t_block, b_block, Hp), lambda bi, ti: (ti, bi, 0)),
            pl.BlockSpec((1, b_block, Hp), lambda bi, ti: (0, bi, 0)),
            pl.BlockSpec((1, b_block, Hp), lambda bi, ti: (0, bi, 0)),
        ],
        scratch_shapes=[
            pltpu.VMEM((b_block, Hp), mm),            # recurrent h (matmul dtype)
            pltpu.VMEM((b_block, Hp), jnp.float32),   # recurrent c (f32)
        ],
    )

    if n_b > 1:
        # Real megacore split of the batch axis (only reached on 2-TC chips);
        # each core gets its own scratch, sequence axis stays serial per core.
        dim_sem = (pltpu.CORE_PARALLEL, pltpu.ARBITRARY)
    else:
        dim_sem = ("arbitrary", "arbitrary")

    kernel = functools.partial(
        _lstm_recurrent_kernel,
        seq_len=seq_len, t_block=t_block, hp=Hp,
        needs_mask=needs_mask, unroll=min(8, t_block))

    h_seq_p, h_out_p, c_out_p = pl.pallas_call(
        kernel,
        out_shape=out_shapes,
        grid_spec=grid_spec,
        compiler_params=pltpu.CompilerParams(
            dimension_semantics=dim_sem,
            vmem_limit_bytes=vmem_limit),
    )(preact_p, h0_p, c0_p, whh_p)

    # Skip the slice copies when already hardware-aligned.
    if (seq_pad, Bp, Hp) == (seq_len, B, H):
        h_seq = h_seq_p
    else:
        h_seq = h_seq_p[:seq_len, :B, :H]
    if (Bp, Hp) == (B, H):
        h_out, c_out = h_out_p, c_out_p
    else:
        h_out = h_out_p[:, :B, :H]
        c_out = c_out_p[:, :B, :H]
    return h_seq, (h_out, c_out)


def init_lstm_params(key, input_size, hidden_size):
    """PyTorch-style uniform(-1/sqrt(H), 1/sqrt(H)) init, gate order [i,f,g,o]."""
    k1, k2, k3, k4 = jax.random.split(key, 4)
    bound = 1.0 / jnp.sqrt(hidden_size)
    w_ih = jax.random.uniform(k1, (input_size, 4 * hidden_size),
                              jnp.float32, -bound, bound)
    w_hh = jax.random.uniform(k2, (hidden_size, 4 * hidden_size),
                              jnp.float32, -bound, bound)
    b_ih = jax.random.uniform(k3, (4 * hidden_size,), jnp.float32, -bound, bound)
    b_hh = jax.random.uniform(k4, (4 * hidden_size,), jnp.float32, -bound, bound)
    b = (b_ih + b_hh).reshape(1, 4 * hidden_size)
    return w_ih, w_hh, b


def lstm_reference(x, params, h0, c0):
    """Pure-JAX f32 reference (lax.scan) for correctness check."""
    w_ih, w_hh, b = params
    H = w_hh.shape[0]

    def step(carry, x_t):
        h, c = carry
        gates = x_t @ w_ih + h @ w_hh + b
        i = jax.nn.sigmoid(gates[:, 0 * H:1 * H])
        f = jax.nn.sigmoid(gates[:, 1 * H:2 * H])
        g = jnp.tanh(gates[:, 2 * H:3 * H])
        o = jax.nn.sigmoid(gates[:, 3 * H:4 * H])
        c_new = f * c + i * g
        h_new = o * jnp.tanh(c_new)
        return (h_new, c_new), h_new

    (h_f, c_f), h_seq = jax.lax.scan(step, (h0[0], c0[0]), x)
    return h_seq, (h_f[None], c_f[None])


if __name__ == "__main__":
    seq_len, batch, input_size, hidden_size = 8, 2, 4, 32

    key = jax.random.PRNGKey(0)
    kx, kh, kc, kp = jax.random.split(key, 4)

    x = jax.random.normal(kx, (seq_len, batch, input_size), jnp.float32)
    h0 = jax.random.normal(kh, (1, batch, hidden_size), jnp.float32)
    c0 = jax.random.normal(kc, (1, batch, hidden_size), jnp.float32)
    params = init_lstm_params(kp, input_size, hidden_size)

    h_seq_r, (h_r, c_r) = lstm_reference(x, params, h0, c0)

    # f32-operand MXU path: tight numerical check against the reference.
    h_seq, (h_fin, c_fin) = lstm_forward(x, params, h0, c0,
                                         matmul_dtype=jnp.float32)
    jax.block_until_ready((h_seq, h_fin, c_fin))
    assert jnp.allclose(h_seq, h_seq_r, atol=1e-4, rtol=1e-4), "h_seq mismatch (f32)"
    assert jnp.allclose(h_fin, h_r, atol=1e-4, rtol=1e-4), "final h mismatch (f32)"
    assert jnp.allclose(c_fin, c_r, atol=1e-4, rtol=1e-4), "final c mismatch (f32)"

    # bf16-operand MXU path (default perf configuration): loose check.
    h_seq_b, (h_fin_b, c_fin_b) = lstm_forward(x, params, h0, c0,
                                               matmul_dtype=jnp.bfloat16)
    jax.block_until_ready((h_seq_b, h_fin_b, c_fin_b))
    assert jnp.allclose(h_seq_b, h_seq_r, atol=5e-2, rtol=5e-2), "h_seq mismatch (bf16)"
    assert jnp.allclose(h_fin_b, h_r, atol=5e-2, rtol=5e-2), "final h mismatch (bf16)"
    assert jnp.allclose(c_fin_b, c_r, atol=5e-2, rtol=5e-2), "final c mismatch (bf16)"

    print("KERNEL_OK")
</pallas_src>

<mosaic_0001>
module attributes {stable_mosaic.version = 11 : i64} {
  func.func @_lstm_recurrent_kernel(%arg0: i32, %arg1: i32, %arg2: memref<8x8x512xf32, #tpu.memory_space<vmem>>, %arg3: memref<1x8x128xf32, #tpu.memory_space<vmem>>, %arg4: memref<1x8x128xf32, #tpu.memory_space<vmem>>, %arg5: memref<128x512xf32, #tpu.memory_space<vmem>>, %arg6: memref<8x8x128xf32, #tpu.memory_space<vmem>>, %arg7: memref<1x8x128xf32, #tpu.memory_space<vmem>>, %arg8: memref<1x8x128xf32, #tpu.memory_space<vmem>>, %arg9: memref<8x128xf32, #tpu.memory_space<vmem>>, %arg10: memref<8x128xf32, #tpu.memory_space<vmem>>) attributes {dimension_semantics = [#tpu.dimension_semantics<arbitrary>, #tpu.dimension_semantics<arbitrary>], iteration_bounds = array<i64: 1, 1>, scalar_prefetch = 0 : i64, scratch_operands = 2 : i64, tpu.core_type = #tpu.core_type<tc>, window_params = [{transform_indices = @transform_0, window_bounds = array<i64: 8, 8, 512>}, {transform_indices = @transform_1, window_bounds = array<i64: 1, 8, 128>}, {transform_indices = @transform_2, window_bounds = array<i64: 1, 8, 128>}, {pipeline_mode = #tpu.pipeline_mode<synchronous>, transform_indices = @transform_3, window_bounds = array<i64: 128, 512>}, {transform_indices = @transform_4, window_bounds = array<i64: 8, 8, 128>}, {transform_indices = @transform_5, window_bounds = array<i64: 1, 8, 128>}, {transform_indices = @transform_6, window_bounds = array<i64: 1, 8, 128>}]} {
    %c0_i32 = arith.constant 0 : i32
    %0 = arith.cmpi eq, %arg1, %c0_i32 : i32
    %1 = arith.extui %0 : i1 to i32
    %c0_i32_0 = arith.constant 0 : i32
    %2 = arith.cmpi ne, %1, %c0_i32_0 : i32
    scf.if %2 {
      %c0_60 = arith.constant 0 : index
      %c0_61 = arith.constant 0 : index
      %c0_62 = arith.constant 0 : index
      %211 = vector.load %arg3[%c0_60, %c0_61, %c0_62] : memref<1x8x128xf32, #tpu.memory_space<vmem>>, vector<1x8x128xf32>
      %212 = vector.shape_cast %211 : vector<1x8x128xf32> to vector<8x128xf32>
      %c0_63 = arith.constant 0 : index
      %c0_64 = arith.constant 0 : index
      %213 = vector.load %arg9[%c0_63, %c0_64] : memref<8x128xf32, #tpu.memory_space<vmem>>, vector<8x128xf32>
      tpu.vector_store %arg9[%c0_63, %c0_64], %212 {strides = array<i32>} : memref<8x128xf32, #tpu.memory_space<vmem>>, vector<8x128xf32>,
      %c0_65 = arith.constant 0 : index
      %c0_66 = arith.constant 0 : index
      %c0_67 = arith.constant 0 : index
      %214 = vector.load %arg4[%c0_65, %c0_66, %c0_67] : memref<1x8x128xf32, #tpu.memory_space<vmem>>, vector<1x8x128xf32>
      %215 = vector.shape_cast %214 : vector<1x8x128xf32> to vector<8x128xf32>
      %c0_68 = arith.constant 0 : index
      %c0_69 = arith.constant 0 : index
      %216 = vector.load %arg10[%c0_68, %c0_69] : memref<8x128xf32, #tpu.memory_space<vmem>>, vector<8x128xf32>
      tpu.vector_store %arg10[%c0_68, %c0_69], %215 {strides = array<i32>} : memref<8x128xf32, #tpu.memory_space<vmem>>, vector<8x128xf32>,
    } else {
    }
    %c0 = arith.constant 0 : index
    %c0_1 = arith.constant 0 : index
    %3 = vector.load %arg5[%c0, %c0_1] : memref<128x512xf32, #tpu.memory_space<vmem>>, vector<128x512xf32>
    %c0_2 = arith.constant 0 : index
    %c0_3 = arith.constant 0 : index
    %4 = vector.load %arg9[%c0_2, %c0_3] : memref<8x128xf32, #tpu.memory_space<vmem>>, vector<8x128xf32>
    %c0_4 = arith.constant 0 : index
    %c0_5 = arith.constant 0 : index
    %5 = vector.load %arg10[%c0_4, %c0_5] : memref<8x128xf32, #tpu.memory_space<vmem>>, vector<8x128xf32>
    %c0_i32_6 = arith.constant 0 : i32
    %6 = arith.index_cast %c0_i32_6 : i32 to index
    %c0_7 = arith.constant 0 : index
    %c0_8 = arith.constant 0 : index
    %7 = vector.load %arg2[%6, %c0_7, %c0_8] : memref<8x8x512xf32, #tpu.memory_space<vmem>>, vector<1x8x512xf32>
    %8 = vector.shape_cast %7 : vector<1x8x512xf32> to vector<8x512xf32>
    %cst = arith.constant dense<0.000000e+00> : vector<8x512xf32>
    %9 = tpu.matmul %4, %3, %cst {dimension_numbers = #tpu.dot_dimension_numbers<[1], [0], [0], [1], [0, 0, 1, 1], [], []>} : vector<8x128xf32>, vector<128x512xf32>, vector<8x512xf32> -> vector<8x512xf32>
    %10 = arith.addf %8, %9 : vector<8x512xf32>
    %11 = vector.extract_strided_slice %10 {offsets = [0, 0], sizes = [8, 384], strides = [1, 1]} : vector<8x512xf32> to vector<8x384xf32>
    %12 = arith.negf %11 : vector<8x384xf32>
    %13 = math.exp %12 : vector<8x384xf32>
    %cst_9 = arith.constant 1.000000e+00 : f32
    %14 = vector.broadcast %cst_9 : f32 to vector<8x384xf32>
    %15 = arith.addf %14, %13 : vector<8x384xf32>
    %16 = arith.divf %14, %15 : vector<8x384xf32>
    %17 = vector.extract_strided_slice %10 {offsets = [0, 384], sizes = [8, 128], strides = [1, 1]} : vector<8x512xf32> to vector<8x128xf32>
    %18 = math.tanh %17 : vector<8x128xf32>
    %19 = vector.extract_strided_slice %16 {offsets = [0, 0], sizes = [8, 128], strides = [1, 1]} : vector<8x384xf32> to vector<8x128xf32>
    %20 = vector.extract_strided_slice %16 {offsets = [0, 128], sizes = [8, 128], strides = [1, 1]} : vector<8x384xf32> to vector<8x128xf32>
    %21 = vector.extract_strided_slice %16 {offsets = [0, 256], sizes = [8, 128], strides = [1, 1]} : vector<8x384xf32> to vector<8x128xf32>
    %22 = arith.mulf %20, %5 : vector<8x128xf32>
    %23 = arith.mulf %19, %18 : vector<8x128xf32>
    %24 = arith.addf %22, %23 : vector<8x128xf32>
    %25 = math.tanh %24 : vector<8x128xf32>
    %26 = arith.mulf %21, %25 : vector<8x128xf32>
    %27 = arith.index_cast %c0_i32_6 : i32 to index
    %c0_10 = arith.constant 0 : index
    %c0_11 = arith.constant 0 : index
    %28 = vector.load %arg6[%27, %c0_10, %c0_11] : memref<8x8x128xf32, #tpu.memory_space<vmem>>, vector<1x8x128xf32>
    %29 = vector.shape_cast %28 : vector<1x8x128xf32> to vector<8x128xf32>
    %30 = vector.shape_cast %26 : vector<8x128xf32> to vector<1x8x128xf32>
    tpu.vector_store %arg6[%27, %c0_10, %c0_11], %30 {strides = array<i32>} : memref<8x8x128xf32, #tpu.memory_space<vmem>>, vector<1x8x128xf32>,
    %c1_i32 = arith.constant 1 : i32
    %31 = arith.index_cast %c1_i32 : i32 to index
    %c0_12 = arith.constant 0 : index
    %c0_13 = arith.constant 0 : index
    %32 = vector.load %arg2[%31, %c0_12, %c0_13] : memref<8x8x512xf32, #tpu.memory_space<vmem>>, vector<1x8x512xf32>
    %33 = vector.shape_cast %32 : vector<1x8x512xf32> to vector<8x512xf32>
    %cst_14 = arith.constant dense<0.000000e+00> : vector<8x512xf32>
    %34 = tpu.matmul %26, %3, %cst_14 {dimension_numbers = #tpu.dot_dimension_numbers<[1], [0], [0], [1], [0, 0, 1, 1], [], []>} : vector<8x128xf32>, vector<128x512xf32>, vector<8x512xf32> -> vector<8x512xf32>
    %35 = arith.addf %33, %34 : vector<8x512xf32>
    %36 = vector.extract_strided_slice %35 {offsets = [0, 0], sizes = [8, 384], strides = [1, 1]} : vector<8x512xf32> to vector<8x384xf32>
    %37 = arith.negf %36 : vector<8x384xf32>
    %38 = math.exp %37 : vector<8x384xf32>
    %cst_15 = arith.constant 1.000000e+00 : f32
    %39 = vector.broadcast %cst_15 : f32 to vector<8x384xf32>
    %40 = arith.addf %39, %38 : vector<8x384xf32>
    %41 = arith.divf %39, %40 : vector<8x384xf32>
    %42 = vector.extract_strided_slice %35 {offsets = [0, 384], sizes = [8, 128], strides = [1, 1]} : vector<8x512xf32> to vector<8x128xf32>
    %43 = math.tanh %42 : vector<8x128xf32>
    %44 = vector.extract_strided_slice %41 {offsets = [0, 0], sizes = [8, 128], strides = [1, 1]} : vector<8x384xf32> to vector<8x128xf32>
    %45 = vector.extract_strided_slice %41 {offsets = [0, 128], sizes = [8, 128], strides = [1, 1]} : vector<8x384xf32> to vector<8x128xf32>
    %46 = vector.extract_strided_slice %41 {offsets = [0, 256], sizes = [8, 128], strides = [1, 1]} : vector<8x384xf32> to vector<8x128xf32>
    %47 = arith.mulf %45, %24 : vector<8x128xf32>
    %48 = arith.mulf %44, %43 : vector<8x128xf32>
    %49 = arith.addf %47, %48 : vector<8x128xf32>
    %50 = math.tanh %49 : vector<8x128xf32>
    %51 = arith.mulf %46, %50 : vector<8x128xf32>
    %52 = arith.index_cast %c1_i32 : i32 to index
    %c0_16 = arith.constant 0 : index
    %c0_17 = arith.constant 0 : index
    %53 = vector.load %arg6[%52, %c0_16, %c0_17] : memref<8x8x128xf32, #tpu.memory_space<vmem>>, vector<1x8x128xf32>
    %54 = vector.shape_cast %53 : vector<1x8x128xf32> to vector<8x128xf32>
    %55 = vector.shape_cast %51 : vector<8x128xf32> to vector<1x8x128xf32>
    tpu.vector_store %arg6[%52, %c0_16, %c0_17], %55 {strides = array<i32>} : memref<8x8x128xf32, #tpu.memory_space<vmem>>, vector<1x8x128xf32>,
    %c2_i32 = arith.constant 2 : i32
    %56 = arith.index_cast %c2_i32 : i32 to index
    %c0_18 = arith.constant 0 : index
    %c0_19 = arith.constant 0 : index
    %57 = vector.load %arg2[%56, %c0_18, %c0_19] : memref<8x8x512xf32, #tpu.memory_space<vmem>>, vector<1x8x512xf32>
    %58 = vector.shape_cast %57 : vector<1x8x512xf32> to vector<8x512xf32>
    %cst_20 = arith.constant dense<0.000000e+00> : vector<8x512xf32>
    %59 = tpu.matmul %51, %3, %cst_20 {dimension_numbers = #tpu.dot_dimension_numbers<[1], [0], [0], [1], [0, 0, 1, 1], [], []>} : vector<8x128xf32>, vector<128x512xf32>, vector<8x512xf32> -> vector<8x512xf32>
    %60 = arith.addf %58, %59 : vector<8x512xf32>
    %61 = vector.extract_strided_slice %60 {offsets = [0, 0], sizes = [8, 384], strides = [1, 1]} : vector<8x512xf32> to vector<8x384xf32>
    %62 = arith.negf %61 : vector<8x384xf32>
    %63 = math.exp %62 : vector<8x384xf32>
    %cst_21 = arith.constant 1.000000e+00 : f32
    %64 = vector.broadcast %cst_21 : f32 to vector<8x384xf32>
    %65 = arith.addf %64, %63 : vector<8x384xf32>
    %66 = arith.divf %64, %65 : vector<8x384xf32>
    %67 = vector.extract_strided_slice %60 {offsets = [0, 384], sizes = [8, 128], strides = [1, 1]} : vector<8x512xf32> to vector<8x128xf32>
    %68 = math.tanh %67 : vector<8x128xf32>
    %69 = vector.extract_strided_slice %66 {offsets = [0, 0], sizes = [8, 128], strides = [1, 1]} : vector<8x384xf32> to vector<8x128xf32>
    %70 = vector.extract_strided_slice %66 {offsets = [0, 128], sizes = [8, 128], strides = [1, 1]} : vector<8x384xf32> to vector<8x128xf32>
    %71 = vector.extract_strided_slice %66 {offsets = [0, 256], sizes = [8, 128], strides = [1, 1]} : vector<8x384xf32> to vector<8x128xf32>
    %72 = arith.mulf %70, %49 : vector<8x128xf32>
    %73 = arith.mulf %69, %68 : vector<8x128xf32>
    %74 = arith.addf %72, %73 : vector<8x128xf32>
    %75 = math.tanh %74 : vector<8x128xf32>
    %76 = arith.mulf %71, %75 : vector<8x128xf32>
    %77 = arith.index_cast %c2_i32 : i32 to index
    %c0_22 = arith.constant 0 : index
    %c0_23 = arith.constant 0 : index
    %78 = vector.load %arg6[%77, %c0_22, %c0_23] : memref<8x8x128xf32, #tpu.memory_space<vmem>>, vector<1x8x128xf32>
    %79 = vector.shape_cast %78 : vector<1x8x128xf32> to vector<8x128xf32>
    %80 = vector.shape_cast %76 : vector<8x128xf32> to vector<1x8x128xf32>
    tpu.vector_store %arg6[%77, %c0_22, %c0_23], %80 {strides = array<i32>} : memref<8x8x128xf32, #tpu.memory_space<vmem>>, vector<1x8x128xf32>,
    %c3_i32 = arith.constant 3 : i32
    %81 = arith.index_cast %c3_i32 : i32 to index
    %c0_24 = arith.constant 0 : index
    %c0_25 = arith.constant 0 : index
    %82 = vector.load %arg2[%81, %c0_24, %c0_25] : memref<8x8x512xf32, #tpu.memory_space<vmem>>, vector<1x8x512xf32>
    %83 = vector.shape_cast %82 : vector<1x8x512xf32> to vector<8x512xf32>
    %cst_26 = arith.constant dense<0.000000e+00> : vector<8x512xf32>
    %84 = tpu.matmul %76, %3, %cst_26 {dimension_numbers = #tpu.dot_dimension_numbers<[1], [0], [0], [1], [0, 0, 1, 1], [], []>} : vector<8x128xf32>, vector<128x512xf32>, vector<8x512xf32> -> vector<8x512xf32>
    %85 = arith.addf %83, %84 : vector<8x512xf32>
    %86 = vector.extract_strided_slice %85 {offsets = [0, 0], sizes = [8, 384], strides = [1, 1]} : vector<8x512xf32> to vector<8x384xf32>
    %87 = arith.negf %86 : vector<8x384xf32>
    %88 = math.exp %87 : vector<8x384xf32>
    %cst_27 = arith.constant 1.000000e+00 : f32
    %89 = vector.broadcast %cst_27 : f32 to vector<8x384xf32>
    %90 = arith.addf %89, %88 : vector<8x384xf32>
    %91 = arith.divf %89, %90 : vector<8x384xf32>
    %92 = vector.extract_strided_slice %85 {offsets = [0, 384], sizes = [8, 128], strides = [1, 1]} : vector<8x512xf32> to vector<8x128xf32>
    %93 = math.tanh %92 : vector<8x128xf32>
    %94 = vector.extract_strided_slice %91 {offsets = [0, 0], sizes = [8, 128], strides = [1, 1]} : vector<8x384xf32> to vector<8x128xf32>
    %95 = vector.extract_strided_slice %91 {offsets = [0, 128], sizes = [8, 128], strides = [1, 1]} : vector<8x384xf32> to vector<8x128xf32>
    %96 = vector.extract_strided_slice %91 {offsets = [0, 256], sizes = [8, 128], strides = [1, 1]} : vector<8x384xf32> to vector<8x128xf32>
    %97 = arith.mulf %95, %74 : vector<8x128xf32>
    %98 = arith.mulf %94, %93 : vector<8x128xf32>
    %99 = arith.addf %97, %98 : vector<8x128xf32>
    %100 = math.tanh %99 : vector<8x128xf32>
    %101 = arith.mulf %96, %100 : vector<8x128xf32>
    %102 = arith.index_cast %c3_i32 : i32 to index
    %c0_28 = arith.constant 0 : index
    %c0_29 = arith.constant 0 : index
    %103 = vector.load %arg6[%102, %c0_28, %c0_29] : memref<8x8x128xf32, #tpu.memory_space<vmem>>, vector<1x8x128xf32>
    %104 = vector.shape_cast %103 : vector<1x8x128xf32> to vector<8x128xf32>
    %105 = vector.shape_cast %101 : vector<8x128xf32> to vector<1x8x128xf32>
    tpu.vector_store %arg6[%102, %c0_28, %c0_29], %105 {strides = array<i32>} : memref<8x8x128xf32, #tpu.memory_space<vmem>>, vector<1x8x128xf32>,
    %c4_i32 = arith.constant 4 : i32
    %106 = arith.index_cast %c4_i32 : i32 to index
    %c0_30 = arith.constant 0 : index
    %c0_31 = arith.constant 0 : index
    %107 = vector.load %arg2[%106, %c0_30, %c0_31] : memref<8x8x512xf32, #tpu.memory_space<vmem>>, vector<1x8x512xf32>
    %108 = vector.shape_cast %107 : vector<1x8x512xf32> to vector<8x512xf32>
    %cst_32 = arith.constant dense<0.000000e+00> : vector<8x512xf32>
    %109 = tpu.matmul %101, %3, %cst_32 {dimension_numbers = #tpu.dot_dimension_numbers<[1], [0], [0], [1], [0, 0, 1, 1], [], []>} : vector<8x128xf32>, vector<128x512xf32>, vector<8x512xf32> -> vector<8x512xf32>
    %110 = arith.addf %108, %109 : vector<8x512xf32>
    %111 = vector.extract_strided_slice %110 {offsets = [0, 0], sizes = [8, 384], strides = [1, 1]} : vector<8x512xf32> to vector<8x384xf32>
    %112 = arith.negf %111 : vector<8x384xf32>
    %113 = math.exp %112 : vector<8x384xf32>
    %cst_33 = arith.constant 1.000000e+00 : f32
    %114 = vector.broadcast %cst_33 : f32 to vector<8x384xf32>
    %115 = arith.addf %114, %113 : vector<8x384xf32>
    %116 = arith.divf %114, %115 : vector<8x384xf32>
    %117 = vector.extract_strided_slice %110 {offsets = [0, 384], sizes = [8, 128], strides = [1, 1]} : vector<8x512xf32> to vector<8x128xf32>
    %118 = math.tanh %117 : vector<8x128xf32>
    %119 = vector.extract_strided_slice %116 {offsets = [0, 0], sizes = [8, 128], strides = [1, 1]} : vector<8x384xf32> to vector<8x128xf32>
    %120 = vector.extract_strided_slice %116 {offsets = [0, 128], sizes = [8, 128], strides = [1, 1]} : vector<8x384xf32> to vector<8x128xf32>
    %121 = vector.extract_strided_slice %116 {offsets = [0, 256], sizes = [8, 128], strides = [1, 1]} : vector<8x384xf32> to vector<8x128xf32>
    %122 = arith.mulf %120, %99 : vector<8x128xf32>
    %123 = arith.mulf %119, %118 : vector<8x128xf32>
    %124 = arith.addf %122, %123 : vector<8x128xf32>
    %125 = math.tanh %124 : vector<8x128xf32>
    %126 = arith.mulf %121, %125 : vector<8x128xf32>
    %127 = arith.index_cast %c4_i32 : i32 to index
    %c0_34 = arith.constant 0 : index
    %c0_35 = arith.constant 0 : index
    %128 = vector.load %arg6[%127, %c0_34, %c0_35] : memref<8x8x128xf32, #tpu.memory_space<vmem>>, vector<1x8x128xf32>
    %129 = vector.shape_cast %128 : vector<1x8x128xf32> to vector<8x128xf32>
    %130 = vector.shape_cast %126 : vector<8x128xf32> to vector<1x8x128xf32>
    tpu.vector_store %arg6[%127, %c0_34, %c0_35], %130 {strides = array<i32>} : memref<8x8x128xf32, #tpu.memory_space<vmem>>, vector<1x8x128xf32>,
    %c5_i32 = arith.constant 5 : i32
    %131 = arith.index_cast %c5_i32 : i32 to index
    %c0_36 = arith.constant 0 : index
    %c0_37 = arith.constant 0 : index
    %132 = vector.load %arg2[%131, %c0_36, %c0_37] : memref<8x8x512xf32, #tpu.memory_space<vmem>>, vector<1x8x512xf32>
    %133 = vector.shape_cast %132 : vector<1x8x512xf32> to vector<8x512xf32>
    %cst_38 = arith.constant dense<0.000000e+00> : vector<8x512xf32>
    %134 = tpu.matmul %126, %3, %cst_38 {dimension_numbers = #tpu.dot_dimension_numbers<[1], [0], [0], [1], [0, 0, 1, 1], [], []>} : vector<8x128xf32>, vector<128x512xf32>, vector<8x512xf32> -> vector<8x512xf32>
    %135 = arith.addf %133, %134 : vector<8x512xf32>
    %136 = vector.extract_strided_slice %135 {offsets = [0, 0], sizes = [8, 384], strides = [1, 1]} : vector<8x512xf32> to vector<8x384xf32>
    %137 = arith.negf %136 : vector<8x384xf32>
    %138 = math.exp %137 : vector<8x384xf32>
    %cst_39 = arith.constant 1.000000e+00 : f32
    %139 = vector.broadcast %cst_39 : f32 to vector<8x384xf32>
    %140 = arith.addf %139, %138 : vector<8x384xf32>
    %141 = arith.divf %139, %140 : vector<8x384xf32>
    %142 = vector.extract_strided_slice %135 {offsets = [0, 384], sizes = [8, 128], strides = [1, 1]} : vector<8x512xf32> to vector<8x128xf32>
    %143 = math.tanh %142 : vector<8x128xf32>
    %144 = vector.extract_strided_slice %141 {offsets = [0, 0], sizes = [8, 128], strides = [1, 1]} : vector<8x384xf32> to vector<8x128xf32>
    %145 = vector.extract_strided_slice %141 {offsets = [0, 128], sizes = [8, 128], strides = [1, 1]} : vector<8x384xf32> to vector<8x128xf32>
    %146 = vector.extract_strided_slice %141 {offsets = [0, 256], sizes = [8, 128], strides = [1, 1]} : vector<8x384xf32> to vector<8x128xf32>
    %147 = arith.mulf %145, %124 : vector<8x128xf32>
    %148 = arith.mulf %144, %143 : vector<8x128xf32>
    %149 = arith.addf %147, %148 : vector<8x128xf32>
    %150 = math.tanh %149 : vector<8x128xf32>
    %151 = arith.mulf %146, %150 : vector<8x128xf32>
    %152 = arith.index_cast %c5_i32 : i32 to index
    %c0_40 = arith.constant 0 : index
    %c0_41 = arith.constant 0 : index
    %153 = vector.load %arg6[%152, %c0_40, %c0_41] : memref<8x8x128xf32, #tpu.memory_space<vmem>>, vector<1x8x128xf32>
    %154 = vector.shape_cast %153 : vector<1x8x128xf32> to vector<8x128xf32>
    %155 = vector.shape_cast %151 : vector<8x128xf32> to vector<1x8x128xf32>
    tpu.vector_store %arg6[%152, %c0_40, %c0_41], %155 {strides = array<i32>} : memref<8x8x128xf32, #tpu.memory_space<vmem>>, vector<1x8x128xf32>,
    %c6_i32 = arith.constant 6 : i32
    %156 = arith.index_cast %c6_i32 : i32 to index
    %c0_42 = arith.constant 0 : index
    %c0_43 = arith.constant 0 : index
    %157 = vector.load %arg2[%156, %c0_42, %c0_43] : memref<8x8x512xf32, #tpu.memory_space<vmem>>, vector<1x8x512xf32>
    %158 = vector.shape_cast %157 : vector<1x8x512xf32> to vector<8x512xf32>
    %cst_44 = arith.constant dense<0.000000e+00> : vector<8x512xf32>
    %159 = tpu.matmul %151, %3, %cst_44 {dimension_numbers = #tpu.dot_dimension_numbers<[1], [0], [0], [1], [0, 0, 1, 1], [], []>} : vector<8x128xf32>, vector<128x512xf32>, vector<8x512xf32> -> vector<8x512xf32>
    %160 = arith.addf %158, %159 : vector<8x512xf32>
    %161 = vector.extract_strided_slice %160 {offsets = [0, 0], sizes = [8, 384], strides = [1, 1]} : vector<8x512xf32> to vector<8x384xf32>
    %162 = arith.negf %161 : vector<8x384xf32>
    %163 = math.exp %162 : vector<8x384xf32>
    %cst_45 = arith.constant 1.000000e+00 : f32
    %164 = vector.broadcast %cst_45 : f32 to vector<8x384xf32>
    %165 = arith.addf %164, %163 : vector<8x384xf32>
    %166 = arith.divf %164, %165 : vector<8x384xf32>
    %167 = vector.extract_strided_slice %160 {offsets = [0, 384], sizes = [8, 128], strides = [1, 1]} : vector<8x512xf32> to vector<8x128xf32>
    %168 = math.tanh %167 : vector<8x128xf32>
    %169 = vector.extract_strided_slice %166 {offsets = [0, 0], sizes = [8, 128], strides = [1, 1]} : vector<8x384xf32> to vector<8x128xf32>
    %170 = vector.extract_strided_slice %166 {offsets = [0, 128], sizes = [8, 128], strides = [1, 1]} : vector<8x384xf32> to vector<8x128xf32>
    %171 = vector.extract_strided_slice %166 {offsets = [0, 256], sizes = [8, 128], strides = [1, 1]} : vector<8x384xf32> to vector<8x128xf32>
    %172 = arith.mulf %170, %149 : vector<8x128xf32>
    %173 = arith.mulf %169, %168 : vector<8x128xf32>
    %174 = arith.addf %172, %173 : vector<8x128xf32>
    %175 = math.tanh %174 : vector<8x128xf32>
    %176 = arith.mulf %171, %175 : vector<8x128xf32>
    %177 = arith.index_cast %c6_i32 : i32 to index
    %c0_46 = arith.constant 0 : index
    %c0_47 = arith.constant 0 : index
    %178 = vector.load %arg6[%177, %c0_46, %c0_47] : memref<8x8x128xf32, #tpu.memory_space<vmem>>, vector<1x8x128xf32>
    %179 = vector.shape_cast %178 : vector<1x8x128xf32> to vector<8x128xf32>
    %180 = vector.shape_cast %176 : vector<8x128xf32> to vector<1x8x128xf32>
    tpu.vector_store %arg6[%177, %c0_46, %c0_47], %180 {strides = array<i32>} : memref<8x8x128xf32, #tpu.memory_space<vmem>>, vector<1x8x128xf32>,
    %c7_i32 = arith.constant 7 : i32
    %181 = arith.index_cast %c7_i32 : i32 to index
    %c0_48 = arith.constant 0 : index
    %c0_49 = arith.constant 0 : index
    %182 = vector.load %arg2[%181, %c0_48, %c0_49] : memref<8x8x512xf32, #tpu.memory_space<vmem>>, vector<1x8x512xf32>
    %183 = vector.shape_cast %182 : vector<1x8x512xf32> to vector<8x512xf32>
    %cst_50 = arith.constant dense<0.000000e+00> : vector<8x512xf32>
    %184 = tpu.matmul %176, %3, %cst_50 {dimension_numbers = #tpu.dot_dimension_numbers<[1], [0], [0], [1], [0, 0, 1, 1], [], []>} : vector<8x128xf32>, vector<128x512xf32>, vector<8x512xf32> -> vector<8x512xf32>
    %185 = arith.addf %183, %184 : vector<8x512xf32>
    %186 = vector.extract_strided_slice %185 {offsets = [0, 0], sizes = [8, 384], strides = [1, 1]} : vector<8x512xf32> to vector<8x384xf32>
    %187 = arith.negf %186 : vector<8x384xf32>
    %188 = math.exp %187 : vector<8x384xf32>
    %cst_51 = arith.constant 1.000000e+00 : f32
    %189 = vector.broadcast %cst_51 : f32 to vector<8x384xf32>
    %190 = arith.addf %189, %188 : vector<8x384xf32>
    %191 = arith.divf %189, %190 : vector<8x384xf32>
    %192 = vector.extract_strided_slice %185 {offsets = [0, 384], sizes = [8, 128], strides = [1, 1]} : vector<8x512xf32> to vector<8x128xf32>
    %193 = math.tanh %192 : vector<8x128xf32>
    %194 = vector.extract_strided_slice %191 {offsets = [0, 0], sizes = [8, 128], strides = [1, 1]} : vector<8x384xf32> to vector<8x128xf32>
    %195 = vector.extract_strided_slice %191 {offsets = [0, 128], sizes = [8, 128], strides = [1, 1]} : vector<8x384xf32> to vector<8x128xf32>
    %196 = vector.extract_strided_slice %191 {offsets = [0, 256], sizes = [8, 128], strides = [1, 1]} : vector<8x384xf32> to vector<8x128xf32>
    %197 = arith.mulf %195, %174 : vector<8x128xf32>
    %198 = arith.mulf %194, %193 : vector<8x128xf32>
    %199 = arith.addf %197, %198 : vector<8x128xf32>
    %200 = math.tanh %199 : vector<8x128xf32>
    %201 = arith.mulf %196, %200 : vector<8x128xf32>
    %202 = arith.index_cast %c7_i32 : i32 to index
    %c0_52 = arith.constant 0 : index
    %c0_53 = arith.constant 0 : index
    %203 = vector.load %arg6[%202, %c0_52, %c0_53] : memref<8x8x128xf32, #tpu.memory_space<vmem>>, vector<1x8x128xf32>
    %204 = vector.shape_cast %203 : vector<1x8x128xf32> to vector<8x128xf32>
    %205 = vector.shape_cast %201 : vector<8x128xf32> to vector<1x8x128xf32>
    tpu.vector_store %arg6[%202, %c0_52, %c0_53], %205 {strides = array<i32>} : memref<8x8x128xf32, #tpu.memory_space<vmem>>, vector<1x8x128xf32>,
    %c8_i32 = arith.constant 8 : i32
    %c0_54 = arith.constant 0 : index
    %c0_55 = arith.constant 0 : index
    %206 = vector.load %arg9[%c0_54, %c0_55] : memref<8x128xf32, #tpu.memory_space<vmem>>, vector<8x128xf32>
    tpu.vector_store %arg9[%c0_54, %c0_55], %201 {strides = array<i32>} : memref<8x128xf32, #tpu.memory_space<vmem>>, vector<8x128xf32>,
    %c0_56 = arith.constant 0 : index
    %c0_57 = arith.constant 0 : index
    %207 = vector.load %arg10[%c0_56, %c0_57] : memref<8x128xf32, #tpu.memory_space<vmem>>, vector<8x128xf32>
    tpu.vector_store %arg10[%c0_56, %c0_57], %199 {strides = array<i32>} : memref<8x128xf32, #tpu.memory_space<vmem>>, vector<8x128xf32>,
    %c0_i32_58 = arith.constant 0 : i32
    %208 = arith.cmpi eq, %arg1, %c0_i32_58 : i32
    %209 = arith.extui %208 : i1 to i32
    %c0_i32_59 = arith.constant 0 : i32
    %210 = arith.cmpi ne, %209, %c0_i32_59 : i32
    scf.if %210 {
      %c0_60 = arith.constant 0 : index
      %c0_61 = arith.constant 0 : index
      %211 = vector.load %arg9[%c0_60, %c0_61] : memref<8x128xf32, #tpu.memory_space<vmem>>, vector<8x128xf32>
      %c0_62 = arith.constant 0 : index
      %c0_63 = arith.constant 0 : index
      %c0_64 = arith.constant 0 : index
      %212 = vector.load %arg7[%c0_62, %c0_63, %c0_64] : memref<1x8x128xf32, #tpu.memory_space<vmem>>, vector<1x8x128xf32>
      %213 = vector.shape_cast %212 : vector<1x8x128xf32> to vector<8x128xf32>
      %214 = vector.shape_cast %211 : vector<8x128xf32> to vector<1x8x128xf32>
      tpu.vector_store %arg7[%c0_62, %c0_63, %c0_64], %214 {strides = array<i32>} : memref<1x8x128xf32, #tpu.memory_space<vmem>>, vector<1x8x128xf32>,
      %c0_65 = arith.constant 0 : index
      %c0_66 = arith.constant 0 : index
      %215 = vector.load %arg10[%c0_65, %c0_66] : memref<8x128xf32, #tpu.memory_space<vmem>>, vector<8x128xf32>
      %c0_67 = arith.constant 0 : index
      %c0_68 = arith.constant 0 : index
      %c0_69 = arith.constant 0 : index
      %216 = vector.load %arg8[%c0_67, %c0_68, %c0_69] : memref<1x8x128xf32, #tpu.memory_space<vmem>>, vector<1x8x128xf32>
      %217 = vector.shape_cast %216 : vector<1x8x128xf32> to vector<8x128xf32>
      %218 = vector.shape_cast %215 : vector<8x128xf32> to vector<1x8x128xf32>
      tpu.vector_store %arg8[%c0_67, %c0_68, %c0_69], %218 {strides = array<i32>} : memref<1x8x128xf32, #tpu.memory_space<vmem>>, vector<1x8x128xf32>,
    } else {
    }
    return
  }
  func.func @transform_0(%arg0: i32, %arg1: i32) -> (i32, i32, i32) {
    %c0_i32 = arith.constant 0 : i32
    %c0_i32_0 = arith.constant 0 : i32
    return %arg1, %arg0, %c0_i32 : i32, i32, i32
  }
  func.func @transform_1(%arg0: i32, %arg1: i32) -> (i32, i32, i32) {
    %c0_i32 = arith.constant 0 : i32
    %c0_i32_0 = arith.constant 0 : i32
    %c0_i32_1 = arith.constant 0 : i32
    return %c0_i32, %arg0, %c0_i32_0 : i32, i32, i32
  }
  func.func @transform_2(%arg0: i32, %arg1: i32) -> (i32, i32, i32) {
    %c0_i32 = arith.constant 0 : i32
    %c0_i32_0 = arith.constant 0 : i32
    %c0_i32_1 = arith.constant 0 : i32
    return %c0_i32, %arg0, %c0_i32_0 : i32, i32, i32
  }
  func.func @transform_3(%arg0: i32, %arg1: i32) -> (i32, i32) {
    %c0_i32 = arith.constant 0 : i32
    %c0_i32_0 = arith.constant 0 : i32
    %c0_i32_1 = arith.constant 0 : i32
    return %c0_i32, %c0_i32_0 : i32, i32
  }
  func.func @transform_4(%arg0: i32, %arg1: i32) -> (i32, i32, i32) {
    %c0_i32 = arith.constant 0 : i32
    %c0_i32_0 = arith.constant 0 : i32
    return %arg1, %arg0, %c0_i32 : i32, i32, i32
  }
  func.func @transform_5(%arg0: i32, %arg1: i32) -> (i32, i32, i32) {
    %c0_i32 = arith.constant 0 : i32
    %c0_i32_0 = arith.constant 0 : i32
    %c0_i32_1 = arith.constant 0 : i32
    return %c0_i32, %arg0, %c0_i32_0 : i32, i32, i32
  }
  func.func @transform_6(%arg0: i32, %arg1: i32) -> (i32, i32, i32) {
    %c0_i32 = arith.constant 0 : i32
    %c0_i32_0 = arith.constant 0 : i32
    %c0_i32_1 = arith.constant 0 : i32
    return %c0_i32, %arg0, %c0_i32_0 : i32, i32, i32
  }
}

</mosaic_0001>

<bundles_post_ra>
// kernel: lstm_forward.1
= control target key start
LH: loop header
LB: loop body
LE: loop exit
PB: predicated region body
PF: predicated region fallthrough
CT: control target
= control target key end

     0   :  { %v3148_v3 = vmov 0.0   ;;  %s3141_s3 = inlined_call_operand.vmem [shape: f32[128,512], index: 3, kind: input, shape index: {}]   ;;  %s3142_s1 = inlined_call_operand.vmem [shape: f32[1,8,128], index: 1, kind: input, shape index: {}]   ;;  %s3143_s0 = inlined_call_operand.vmem [shape: f32[8,8,512], index: 0, kind: input, shape index: {}]   ;;  %s3144_s2 = inlined_call_operand.vmem [shape: f32[1,8,128], index: 2, kind: input, shape index: {}]   ;;  %s3145_s4 = inlined_call_operand.vmem [shape: f32[8,8,128], index: 4, kind: output, shape index: {0}]   ;;  %s3146_s6 = inlined_call_operand.vmem [shape: f32[1,8,128], index: 6, kind: output, shape index: {2}]   ;;  %s3147_s5 = inlined_call_operand.vmem [shape: f32[1,8,128], index: 5, kind: output, shape index: {1}]  }
   0x1   :  { %v1820_v0 = vld [vmem:[%s3141_s3 + $0x1e8] sm:$0xff]  ;;  %v1825_v1 = vld [vmem:[%s3141_s3 + $0x1e0] sm:$0xff]  ;;  %162 = vmatprep.mubr.f32.mxu0 %v3148_v3  ;;  %233 = vmatprep.mubr.f32.mxu1 %v3148_v3  ;;  %v1867_v9 = vld [vmem:[%s3141_s3 + $0x1f8] sm:$0xff] }
   0x2   :  { %3217 = vst [vmem:[#allocation4_spill] sm:$0xff] %v1820_v0  ;;  %v1830_v2 = vld [vmem:[%s3141_s3 + $0x1c8] sm:$0xff]  ;;  %98 = vmatprep.subr.mxu0 %v1820_v0  ;;  %v1838_v4 = vld [vmem:[%s3141_s3 + $0x1c0] sm:$0xff]  ;;  %3218 = vst [vmem:[#allocation5_spill] sm:$0xff] %v1867_v9  ;;  %169 = vmatprep.subr.mxu1 %v1867_v9 }
   0x3   :  { %99 = vmatpush1.msra.mxu0 %v1825_v1  ;;  %v1844_v5 = vld [vmem:[%s3141_s3 + $0x1a8] sm:$0xff]  ;;  %v1850_v6 = vld [vmem:[%s3141_s3 + $0x1a0] sm:$0xff]  ;;  %v1879_v11 = vld [vmem:[%s3141_s3 + $0x1f0] sm:$0xff] }
   0x4   :  { %100 = vmatprep.subr.mxu0 %v1830_v2  ;;  %v1856_v7 = vld [vmem:[%s3141_s3 + $0x188] sm:$0xff]  ;;  %v1862_v8 = vld [vmem:[%s3141_s3 + $0x180] sm:$0xff]  ;;  %170 = vmatpush1.msra.mxu1 %v1879_v11  ;;  %v1891_v13 = vld [vmem:[%s3141_s3 + $0x1d8] sm:$0xff] }
   0x5   :  { %101 = vmatpush1.msra.mxu0 %v1838_v4  ;;  %v1873_v10 = vld [vmem:[%s3141_s3 + $0x168] sm:$0xff]  ;;  %v1885_v12 = vld [vmem:[%s3141_s3 + $0x160] sm:$0xff]  ;;  %v1896_v14 = vld [vmem:[%s3141_s3 + $0x1d0] sm:$0xff]  ;;  %171 = vmatprep.subr.mxu1 %v1891_v13 }
   0x6   :  { %102 = vmatprep.subr.mxu0 %v1844_v5  ;;  %v1902_v15 = vld [vmem:[%s3141_s3 + $0x148] sm:$0xff]  ;;  %v1908_v16 = vld [vmem:[%s3141_s3 + $0x1b8] sm:$0xff]  ;;  %v1914_v17 = vld [vmem:[%s3141_s3 + $0x140] sm:$0xff]  ;;  %172 = vmatpush1.msra.mxu1 %v1896_v14 }
   0x7   :  { %103 = vmatpush1.msra.mxu0 %v1850_v6  ;;  %v1920_v18 = vld [vmem:[%s3141_s3 + $0x1b0] sm:$0xff]  ;;  %v1925_v19 = vld [vmem:[%s3141_s3 + $0x198] sm:$0xff]  ;;  %v1931_v20 = vld [vmem:[%s3141_s3 + $0x128] sm:$0xff]  ;;  %173 = vmatprep.subr.mxu1 %v1908_v16 }
   0x8   :  { %104 = vmatprep.subr.mxu0 %v1856_v7  ;;  %v1937_v21 = vld [vmem:[%s3141_s3 + $0x190] sm:$0xff]  ;;  %v1943_v22 = vld [vmem:[%s3141_s3 + $0x120] sm:$0xff]  ;;  %174 = vmatpush1.msra.mxu1 %v1920_v18  ;;  %v1949_v23 = vld [vmem:[%s3141_s3 + $0x178] sm:$0xff] }
   0x9   :  { %105 = vmatpush1.msra.mxu0 %v1862_v8  ;;  %v1955_v24 = vld [vmem:[%s3141_s3 + $0x108] sm:$0xff]  ;;  %175 = vmatprep.subr.mxu1 %v1925_v19  ;;  %v1961_v25 = vld [vmem:[%s3141_s3 + $0x170] sm:$0xff]  ;;  %v1967_v26 = vld [vmem:[%s3141_s3 + $0x100] sm:$0xff] }
   0xa   :  { %106 = vmatprep.subr.mxu0 %v1873_v10  ;;  %176 = vmatpush1.msra.mxu1 %v1937_v21  ;;  %v1973_v27 = vld [vmem:[%s3141_s3 + $0x158] sm:$0xff]  ;;  %v1979_v28 = vld [vmem:[%s3141_s3 + $0xe8] sm:$0xff]  ;;  %v1985_v29 = vld [vmem:[%s3141_s3 + $0x150] sm:$0xff] }
   0xb   :  { %107 = vmatpush1.msra.mxu0 %v1885_v12  ;;  %177 = vmatprep.subr.mxu1 %v1949_v23  ;;  %v1991_v30 = vld [vmem:[%s3141_s3 + $0xe0] sm:$0xff]  ;;  %v1997_v31 = vld [vmem:[%s3141_s3 + $0x138] sm:$0xff]  ;;  %v2003_v32 = vld [vmem:[%s3141_s3 + $0xc8] sm:$0xff] }
   0xc   :  { %108 = vmatprep.subr.mxu0 %v1902_v15  ;;  %178 = vmatpush1.msra.mxu1 %v1961_v25  ;;  %v2009_v33 = vld [vmem:[%s3141_s3 + $0x130] sm:$0xff]  ;;  %v2015_v34 = vld [vmem:[%s3141_s3 + $0xc0] sm:$0xff]  ;;  %v2021_v35 = vld [vmem:[%s3141_s3 + $0x118] sm:$0xff] }
   0xd   :  { %109 = vmatpush1.msra.mxu0 %v1914_v17  ;;  %179 = vmatprep.subr.mxu1 %v1973_v27  ;;  %v2027_v36 = vld [vmem:[%s3141_s3 + $0xa8] sm:$0xff]  ;;  %v2033_v37 = vld [vmem:[%s3141_s3 + $0x110] sm:$0xff]  ;;  %v2039_v38 = vld [vmem:[%s3141_s3 + $0xa0] sm:$0xff] }
   0xe   :  { %110 = vmatprep.subr.mxu0 %v1931_v20  ;;  %180 = vmatpush1.msra.mxu1 %v1985_v29  ;;  %v2045_v39 = vld [vmem:[%s3141_s3 + $0xf8] sm:$0xff]  ;;  %v2051_v40 = vld [vmem:[%s3141_s3 + $0x88] sm:$0xff]  ;;  %v2057_v41 = vld [vmem:[%s3141_s3 + $0xf0] sm:$0xff] }
   0xf   :  { %111 = vmatpush1.msra.mxu0 %v1943_v22  ;;  %181 = vmatprep.subr.mxu1 %v1997_v31  ;;  %v2063_v42 = vld [vmem:[%s3141_s3 + $0x80] sm:$0xff]  ;;  %v2069_v43 = vld [vmem:[%s3141_s3 + $0xd8] sm:$0xff]  ;;  %v2075_v44 = vld [vmem:[%s3141_s3 + $0x68] sm:$0xff] }
  0x10   :  { %112 = vmatprep.subr.mxu0 %v1955_v24  ;;  %182 = vmatpush1.msra.mxu1 %v2009_v33  ;;  %3219 = vst [vmem:[#allocation6_spill] sm:$0xff] %v2075_v44  ;;  %v2081_v45 = vld [vmem:[%s3141_s3 + $0xd0] sm:$0xff]  ;;  %v2087_v46 = vld [vmem:[%s3141_s3 + $0x60] sm:$0xff]  ;;  %v2093_v47 = vld [vmem:[%s3141_s3 + $0xb8] sm:$0xff] }
  0x11   :  { %113 = vmatpush1.msra.mxu0 %v1967_v26  ;;  %183 = vmatprep.subr.mxu1 %v2021_v35  ;;  %3220 = vst [vmem:[#allocation7_spill] sm:$0xff] %v2087_v46  ;;  %v2099_v48 = vld [vmem:[%s3141_s3 + $0x48] sm:$0xff]  ;;  %v2105_v49 = vld [vmem:[%s3141_s3 + $0xb0] sm:$0xff]  ;;  %v2111_v50 = vld [vmem:[%s3141_s3 + $0x40] sm:$0xff] }
  0x12   :  { %114 = vmatprep.subr.mxu0 %v1979_v28  ;;  %184 = vmatpush1.msra.mxu1 %v2033_v37  ;;  %3221 = vst [vmem:[#allocation8_spill] sm:$0xff] %v2099_v48  ;;  %3222 = vst [vmem:[#allocation9_spill] sm:$0xff] %v2111_v50  ;;  %v2117_v51 = vld [vmem:[%s3141_s3 + $0x98] sm:$0xff]  ;;  %v2123_v52 = vld [vmem:[%s3141_s3 + $0x28] sm:$0xff] }
  0x13   :  { %115 = vmatpush1.msra.mxu0 %v1991_v30  ;;  %185 = vmatprep.subr.mxu1 %v2045_v39  ;;  %3223 = vst [vmem:[#allocation10_spill] sm:$0xff] %v2123_v52  ;;  %v2129_v53 = vld [vmem:[%s3141_s3 + $0x90] sm:$0xff]  ;;  %v2135_v54 = vld [vmem:[%s3141_s3 + $0x20] sm:$0xff]  ;;  %v2141_v55 = vld [vmem:[%s3141_s3 + $0x78] sm:$0xff] }
  0x14   :  { %116 = vmatprep.subr.mxu0 %v2003_v32  ;;  %186 = vmatpush1.msra.mxu1 %v2057_v41  ;;  %3224 = vst [vmem:[#allocation11_spill] sm:$0xff] %v2135_v54  ;;  %3225 = vst [vmem:[#allocation12_spill] sm:$0xff] %v2141_v55  ;;  %v2147_v56 = vld [vmem:[%s3141_s3 + $0x8] sm:$0xff]  ;;  %v2153_v57 = vld [vmem:[%s3141_s3 + $0x70] sm:$0xff] }
  0x15   :  { %117 = vmatpush1.msra.mxu0 %v2015_v34  ;;  %187 = vmatprep.subr.mxu1 %v2069_v43  ;;  %3226 = vst [vmem:[#allocation13_spill] sm:$0xff] %v2147_v56  ;;  %3227 = vst [vmem:[#allocation14_spill] sm:$0xff] %v2153_v57  ;;  %v2159_v58 = vld [vmem:[%s3141_s3] sm:$0xff]  ;;  %v2165_v59 = vld [vmem:[%s3141_s3 + $0x58] sm:$0xff] }
  0x16   :  { %118 = vmatprep.subr.mxu0 %v2027_v36  ;;  %188 = vmatpush1.msra.mxu1 %v2081_v45  ;;  %3228 = vst [vmem:[#allocation15_spill] sm:$0xff] %v2159_v58  ;;  %3229 = vst [vmem:[#allocation16_spill] sm:$0xff] %v2165_v59  ;;  %v24_v60 = vld [vmem:[%s3142_s1] sm:$0xff]  ;;  %v2175_v61 = vld [vmem:[%s3141_s3 + $0x50] sm:$0xff] }
  0x17   :  { %119 = vmatpush1.msra.mxu0 %v2039_v38  ;;  %189 = vmatprep.subr.mxu1 %v2093_v47  ;;  %3230 = vst [vmem:[#allocation17_spill] sm:$0xff] %v2175_v61  ;;  %v2182_v62 = vld [vmem:[%s3141_s3 + $0x38] sm:$0xff]  ;;  %v2189_v63 = vld [vmem:[%s3141_s3 + $0x30] sm:$0xff] }
  0x18   :  { %120 = vmatprep.subr.mxu0 %v2051_v40  ;;  %190 = vmatpush1.msra.mxu1 %v2105_v49  ;;  %3231 = vst [vmem:[#allocation18_spill] sm:$0xff] %v2182_v62  ;;  %3232 = vst [vmem:[#allocation19_spill] sm:$0xff] %v2189_v63  ;;  %v2195_v3 = vld [vmem:[%s3141_s3 + $0x18] sm:$0xff] }
  0x19   :  { %121 = vmatpush1.msra.mxu0 %v2063_v42  ;;  %191 = vmatprep.subr.mxu1 %v2117_v51  ;;  %3233 = vst [vmem:[#allocation20_spill] sm:$0xff] %v2195_v3 }
  0x1a   :  { %122 = vmatprep.subr.mxu0 %v2075_v44  ;;  %192 = vmatpush1.msra.mxu1 %v2129_v53 }
  0x1b   :  { %123 = vmatpush1.msra.mxu0 %v2087_v46  ;;  %193 = vmatprep.subr.mxu1 %v2141_v55 }
  0x1c   :  { %124 = vmatprep.subr.mxu0 %v2099_v48  ;;  %194 = vmatpush1.msra.mxu1 %v2153_v57 }
  0x1d   :  { %125 = vmatpush1.msra.mxu0 %v2111_v50  ;;  %195 = vmatprep.subr.mxu1 %v2165_v59 }
  0x1e   :  { %126 = vmatprep.subr.mxu0 %v2123_v52  ;;  %196 = vmatpush1.msra.mxu1 %v2175_v61 }
  0x1f   :  { %127 = vmatpush1.msra.mxu0 %v2135_v54  ;;  %197 = vmatprep.subr.mxu1 %v2182_v62 }
  0x20   :  { %128 = vmatprep.subr.mxu0 %v2147_v56  ;;  %198 = vmatpush1.msra.mxu1 %v2189_v63 }
  0x21   :  { %129 = vmatpush1.msra.mxu0 %v2159_v58  ;;  %v2201_v58 = vld [vmem:[%s3141_s3 + $0x10] sm:$0xff]  ;;  %199 = vmatprep.subr.mxu1 %v2195_v3 }
  0x22   :  { %163 = vmatmul.mubr.f32.vlgmr.msra.gmra.mxu0 %v24_v60  ;;  %3234 = vst [vmem:[#allocation21_spill] sm:$0xff] %v2201_v58  ;;  %274 = vmatprep.subr.mxu0 %v1820_v0 }
  0x23   :  { %275 = vmatpush1.msra.mxu0 %v1825_v1  ;;  %200 = vmatpush1.msra.mxu1 %v2201_v58 }
  0x24   :  { %276 = vmatprep.subr.mxu0 %v1830_v2  ;;  %234 = vmatmul.mubr.f32.vlgmr.msra.gmra.mxu1 %v24_v60  ;;  %v3235_v60 = vld [vmem:[#allocation15_spill] sm:$0xff] }
  0x25   :  { %277 = vmatpush1.msra.mxu0 %v1838_v4  ;;  %345 = vmatprep.subr.mxu1 %v1867_v9 }
  0x26   :  { %346 = vmatpush1.msra.mxu1 %v1879_v11  ;;  %278 = vmatprep.subr.mxu0 %v1844_v5 }
  0x27   :  { %347 = vmatprep.subr.mxu1 %v1891_v13  ;;  %279 = vmatpush1.msra.mxu0 %v1850_v6 }
  0x28   :  { %348 = vmatpush1.msra.mxu1 %v1896_v14  ;;  %280 = vmatprep.subr.mxu0 %v1856_v7 }
  0x29   :  { %349 = vmatprep.subr.mxu1 %v1908_v16  ;;  %281 = vmatpush1.msra.mxu0 %v1862_v8 }
  0x2a   :  { %350 = vmatpush1.msra.mxu1 %v1920_v18  ;;  %282 = vmatprep.subr.mxu0 %v1873_v10 }
  0x2b   :  { %351 = vmatprep.subr.mxu1 %v1925_v19  ;;  %283 = vmatpush1.msra.mxu0 %v1885_v12 }
  0x2c   :  { %352 = vmatpush1.msra.mxu1 %v1937_v21  ;;  %284 = vmatprep.subr.mxu0 %v1902_v15 }
  0x2d   :  { %353 = vmatprep.subr.mxu1 %v1949_v23  ;;  %285 = vmatpush1.msra.mxu0 %v1914_v17 }
  0x2e   :  { %354 = vmatpush1.msra.mxu1 %v1961_v25  ;;  %286 = vmatprep.subr.mxu0 %v1931_v20 }
  0x2f   :  { %355 = vmatprep.subr.mxu1 %v1973_v27  ;;  %287 = vmatpush1.msra.mxu0 %v1943_v22 }
  0x30   :  { %356 = vmatpush1.msra.mxu1 %v1985_v29  ;;  %288 = vmatprep.subr.mxu0 %v1955_v24 }
  0x31   :  { %357 = vmatprep.subr.mxu1 %v1997_v31  ;;  %289 = vmatpush1.msra.mxu0 %v1967_v26 }
  0x32   :  { %358 = vmatpush1.msra.mxu1 %v2009_v33  ;;  %290 = vmatprep.subr.mxu0 %v1979_v28 }
  0x33   :  { %359 = vmatprep.subr.mxu1 %v2021_v35  ;;  %291 = vmatpush1.msra.mxu0 %v1991_v30 }
  0x34   :  { %360 = vmatpush1.msra.mxu1 %v2033_v37  ;;  %292 = vmatprep.subr.mxu0 %v2003_v32 }
  0x35   :  { %361 = vmatprep.subr.mxu1 %v2045_v39  ;;  %293 = vmatpush1.msra.mxu0 %v2015_v34 }
  0x36   :  { %362 = vmatpush1.msra.mxu1 %v2057_v41  ;;  %294 = vmatprep.subr.mxu0 %v2027_v36 }
  0x37   :  { %363 = vmatprep.subr.mxu1 %v2069_v43  ;;  %295 = vmatpush1.msra.mxu0 %v2039_v38 }
  0x38   :  { %364 = vmatpush1.msra.mxu1 %v2081_v45  ;;  %296 = vmatprep.subr.mxu0 %v2051_v40 }
  0x39   :  { %365 = vmatprep.subr.mxu1 %v2093_v47  ;;  %297 = vmatpush1.msra.mxu0 %v2063_v42 }
  0x3a   :  { %366 = vmatpush1.msra.mxu1 %v2105_v49  ;;  %298 = vmatprep.subr.mxu0 %v2075_v44 }
  0x3b   :  { %367 = vmatprep.subr.mxu1 %v2117_v51  ;;  %299 = vmatpush1.msra.mxu0 %v2087_v46 }
  0x3c   :  { %368 = vmatpush1.msra.mxu1 %v2129_v53  ;;  %300 = vmatprep.subr.mxu0 %v2099_v48  ;;  %v3236_v48 = vmov 0.0  }
  0x3d   :  { %369 = vmatprep.subr.mxu1 %v2141_v55  ;;  %301 = vmatpush1.msra.mxu0 %v2111_v50 }
  0x3e   :  { %370 = vmatpush1.msra.mxu1 %v2153_v57  ;;  %302 = vmatprep.subr.mxu0 %v2123_v52 }
  0x3f   :  { %371 = vmatprep.subr.mxu1 %v2165_v59  ;;  %303 = vmatpush1.msra.mxu0 %v2135_v54 }
  0x40   :  { %372 = vmatpush1.msra.mxu1 %v2175_v61  ;;  %304 = vmatprep.subr.mxu0 %v2147_v56  ;;  %v94_v56 = vld [vmem:[%s3143_s0] sm:$0xff]  ;;  %v97_v61 = vld [vmem:[%s3143_s0 + $0x18] sm:$0xff] }
  0x41   :  { %373 = vmatprep.subr.mxu1 %v2182_v62  ;;  %305 = vmatpush1.msra.mxu0 %v3235_v60  ;;  %v95_v60 = vld [vmem:[%s3143_s0 + $0x8] sm:$0xff] }
  0x42   :  { %374 = vmatpush1.msra.mxu1 %v2189_v63  ;;  %338 = vmatprep.mubr.f32.mxu0 %v3236_v48 }
  0x43   :  { %375 = vmatprep.subr.mxu1 %v2195_v3  ;;  %409 = vmatprep.mubr.f32.mxu1 %v3236_v48 }
  0x44   :  { %376 = vmatpush1.msra.mxu1 %v2201_v58  ;;  %451 = vmatprep.subr.mxu0 %v1820_v0 }
  0x45   :  { %522 = vmatprep.subr.mxu1 %v1867_v9  ;;  %v96_v9 = vld [vmem:[%s3143_s0 + $0x10] sm:$0xff] }
  0xe2   :  { %v164_v54 = vpop.f32.mrf.mxu0 }
  0xe3   :  { %v240_v63 = vadd.f32 %v164_v54, %v94_v56 }
  0xe4   :  { %v166_v62 = vpop.f32.mrf.mxu0  ;;  %v235_v0 = vpop.f32.mrf.mxu1 }
  0xe5   :  { %v1529_v3 = vmul.f32 -1.442695, %v240_v63  ;;  %v241_v52 = vadd.f32 %v166_v62, %v95_v60  ;;  %v242_v58 = vadd.f32 %v235_v0, %v96_v9  ;;  %v26_v0 = vld [vmem:[%s3144_s2] sm:$0xff] }
  0xe6   :  { %v237_v50 = vpop.f32.mrf.mxu1 }
  0xe7   :  { %1589 = vpow2.f32 %v1529_v3  ;;  %v1530_v48 = vmul.f32 -1.442695, %v241_v52  ;;  %v1531_v59 = vmul.f32 -1.442695, %v242_v58  ;;  %v243_v57 = vadd.f32 %v237_v50, %v97_v61 }
  0xe9   :  { %1591 = vpow2.f32 %v1530_v48 }
  0xea   :  { %1593 = vpow2.f32 %v1531_v59 }
  0xeb   :  { %1595 = vtanh.f32 %v243_v57 }
  0xf4   :  { %v1590_v54 = vpop.eup %1589 }
  0xf5   :  { %v253_v56 = vadd.f32 1.0, %v1590_v54  ;;  %v3238_v54 = vld [vmem:[#allocation14_spill] sm:$0xff] }
  0xf6   :  { %v1592_v62 = vpop.eup %1591 }
  0xf7   :  { %1597 = vrcp.f32 %v253_v56  ;;  %v254_v3 = vadd.f32 1.0, %v1592_v62  ;;  %v1594_v48 = vpop.eup %1593  ;;  %v3239_v56 = vld [vmem:[#allocation8_spill] sm:$0xff] }
  0xf8   :  { %v1596_v52 = vpop.eup %1595  ;;  %v255_v60 = vadd.f32 1.0, %v1594_v48  ;;  %v3240_v62 = vld [vmem:[#allocation16_spill] sm:$0xff]  ;;  %v3242_v48 = vld [vmem:[#allocation17_spill] sm:$0xff] }
  0xf9   :  { %1599 = vrcp.f32 %v254_v3  ;;  %v3241_v3 = vld [vmem:[#allocation9_spill] sm:$0xff] }
  0xfa   :  { %1601 = vrcp.f32 %v255_v60  ;;  %v3247_v60 = vld [vmem:[#allocation13_spill] sm:$0xff] }
 0x104   :  { %v1598_v63 = vpop.eup %1597 }
 0x105   :  { %v264_v58 = vmul.f32 %v1598_v63, %v1596_v52  ;;  %v3243_v52 = vld [vmem:[#allocation10_spill] sm:$0xff] }
 0x106   :  { %v1600_v9 = vpop.eup %1599  ;;  %v3244_v63 = vld [vmem:[#allocation18_spill] sm:$0xff] }
 0x107   :  { %v263_v46 = vmul.f32 %v1600_v9, %v26_v0  ;;  %v1602_v57 = vpop.eup %1601  ;;  %v3245_v0 = vld [vmem:[#allocation11_spill] sm:$0xff] }
 0x108   :  { %v3246_v9 = vld [vmem:[#allocation19_spill] sm:$0xff] }
 0x109   :  { %v2289_v50 = vadd.f32 %v264_v58, %v263_v46  ;;  %v3237_v46 = vld [vmem:[#allocation7_spill] sm:$0xff]  ;;  %v3248_v58 = vld [vmem:[#allocation20_spill] sm:$0xff] }
 0x10b   :  { %1603 = vtanh.f32 %v2289_v50 }
 0x118   :  { %v1604_v59 = vpop.eup %1603 }
 0x119   :  { %v267_v61 = vmul.f32 %v1604_v59, %v1602_v57  ;;  %v3249_v57 = vld [vmem:[#allocation15_spill] sm:$0xff]  ;;  %v3250_v59 = vmov 0.0  }
 0x11b   :  { %268 = vst [vmem:[%s3145_s4] sm:$0xff] %v267_v61  ;;  %339 = vmatmul.mubr.f32.vlgmr.msra.gmra.mxu0 %v267_v61  ;;  %410 = vmatmul.mubr.f32.vlgmr.msra.gmra.mxu1 %v267_v61  ;;  %v3251_v61 = vld [vmem:[#allocation21_spill] sm:$0xff] }
 0x11c   :  { %452 = vmatpush1.msra.mxu0 %v1825_v1  ;;  %523 = vmatpush1.msra.mxu1 %v1879_v11 }
 0x11d   :  { %453 = vmatprep.subr.mxu0 %v1830_v2  ;;  %524 = vmatprep.subr.mxu1 %v1891_v13 }
 0x11e   :  { %454 = vmatpush1.msra.mxu0 %v1838_v4  ;;  %525 = vmatpush1.msra.mxu1 %v1896_v14 }
 0x11f   :  { %455 = vmatprep.subr.mxu0 %v1844_v5  ;;  %526 = vmatprep.subr.mxu1 %v1908_v16 }
 0x120   :  { %456 = vmatpush1.msra.mxu0 %v1850_v6  ;;  %527 = vmatpush1.msra.mxu1 %v1920_v18 }
 0x121   :  { %457 = vmatprep.subr.mxu0 %v1856_v7  ;;  %528 = vmatprep.subr.mxu1 %v1925_v19 }
 0x122   :  { %458 = vmatpush1.msra.mxu0 %v1862_v8  ;;  %529 = vmatpush1.msra.mxu1 %v1937_v21 }
 0x123   :  { %459 = vmatprep.subr.mxu0 %v1873_v10  ;;  %530 = vmatprep.subr.mxu1 %v1949_v23 }
 0x124   :  { %460 = vmatpush1.msra.mxu0 %v1885_v12  ;;  %531 = vmatpush1.msra.mxu1 %v1961_v25 }
 0x125   :  { %461 = vmatprep.subr.mxu0 %v1902_v15  ;;  %532 = vmatprep.subr.mxu1 %v1973_v27 }
 0x126   :  { %462 = vmatpush1.msra.mxu0 %v1914_v17  ;;  %533 = vmatpush1.msra.mxu1 %v1985_v29 }
 0x127   :  { %463 = vmatprep.subr.mxu0 %v1931_v20  ;;  %534 = vmatprep.subr.mxu1 %v1997_v31 }
 0x128   :  { %464 = vmatpush1.msra.mxu0 %v1943_v22  ;;  %535 = vmatpush1.msra.mxu1 %v2009_v33 }
 0x129   :  { %465 = vmatprep.subr.mxu0 %v1955_v24  ;;  %536 = vmatprep.subr.mxu1 %v2021_v35 }
 0x12a   :  { %466 = vmatpush1.msra.mxu0 %v1967_v26  ;;  %537 = vmatpush1.msra.mxu1 %v2033_v37 }
 0x12b   :  { %467 = vmatprep.subr.mxu0 %v1979_v28  ;;  %538 = vmatprep.subr.mxu1 %v2045_v39 }
 0x12c   :  { %468 = vmatpush1.msra.mxu0 %v1991_v30  ;;  %539 = vmatpush1.msra.mxu1 %v2057_v41 }
 0x12d   :  { %469 = vmatprep.subr.mxu0 %v2003_v32  ;;  %540 = vmatprep.subr.mxu1 %v2069_v43 }
 0x12e   :  { %470 = vmatpush1.msra.mxu0 %v2015_v34  ;;  %541 = vmatpush1.msra.mxu1 %v2081_v45 }
 0x12f   :  { %471 = vmatprep.subr.mxu0 %v2027_v36  ;;  %542 = vmatprep.subr.mxu1 %v2093_v47 }
 0x130   :  { %472 = vmatpush1.msra.mxu0 %v2039_v38  ;;  %543 = vmatpush1.msra.mxu1 %v2105_v49 }
 0x131   :  { %473 = vmatprep.subr.mxu0 %v2051_v40  ;;  %544 = vmatprep.subr.mxu1 %v2117_v51 }
 0x132   :  { %474 = vmatpush1.msra.mxu0 %v2063_v42  ;;  %545 = vmatpush1.msra.mxu1 %v2129_v53 }
 0x133   :  { %475 = vmatprep.subr.mxu0 %v2075_v44  ;;  %546 = vmatprep.subr.mxu1 %v2141_v55 }
 0x134   :  { %476 = vmatpush1.msra.mxu0 %v3237_v46  ;;  %547 = vmatpush1.msra.mxu1 %v3238_v54 }
 0x135   :  { %477 = vmatprep.subr.mxu0 %v3239_v56  ;;  %548 = vmatprep.subr.mxu1 %v3240_v62  ;;  %v1535_v62 = vld [vmem:[%s3143_s0 + $0x38] sm:$0xff] }
 0x136   :  { %478 = vmatpush1.msra.mxu0 %v3241_v3  ;;  %549 = vmatpush1.msra.mxu1 %v3242_v48  ;;  %v3252_v48 = vld [vmem:[#allocation4_spill] sm:$0xff] }
 0x137   :  { %479 = vmatprep.subr.mxu0 %v3243_v52  ;;  %550 = vmatprep.subr.mxu1 %v3244_v63  ;;  %v3253_v52 = vld [vmem:[#allocation5_spill] sm:$0xff] }
 0x138   :  { %480 = vmatpush1.msra.mxu0 %v3245_v0  ;;  %551 = vmatpush1.msra.mxu1 %v3246_v9  ;;  %v1532_v9 = vld [vmem:[%s3143_s0 + $0x20] sm:$0xff] }
 0x139   :  { %481 = vmatprep.subr.mxu0 %v3247_v60  ;;  %552 = vmatprep.subr.mxu1 %v3248_v58  ;;  %v1533_v58 = vld [vmem:[%s3143_s0 + $0x28] sm:$0xff] }
 0x13a   :  { %482 = vmatpush1.msra.mxu0 %v3249_v57  ;;  %515 = vmatprep.mubr.f32.mxu0 %v3250_v59 }
 0x13b   :  { %553 = vmatpush1.msra.mxu1 %v3251_v61  ;;  %586 = vmatprep.mubr.f32.mxu1 %v3250_v59 }
 0x13c   :  { %628 = vmatprep.subr.mxu0 %v3252_v48  ;;  %699 = vmatprep.subr.mxu1 %v3253_v52  ;;  %v1534_v52 = vld [vmem:[%s3143_s0 + $0x30] sm:$0xff] }
 0x1db   :  { %v340_v0 = vpop.f32.mrf.mxu0  ;;  %v411_v48 = vpop.f32.mrf.mxu1 }
 0x1dc   :  { %v416_v57 = vadd.f32 %v1532_v9, %v340_v0  ;;  %v418_v59 = vadd.f32 %v1534_v52, %v411_v48 }
 0x1dd   :  { %v342_v60 = vpop.f32.mrf.mxu0  ;;  %v413_v56 = vpop.f32.mrf.mxu1 }
 0x1de   :  { %v1536_v63 = vmul.f32 -1.442695, %v416_v57  ;;  %v417_v3 = vadd.f32 %v1533_v58, %v342_v60  ;;  %v1538_v54 = vmul.f32 -1.442695, %v418_v59  ;;  %v419_v0 = vadd.f32 %v1535_v62, %v413_v56  ;;  %v3256_v62 = vld [vmem:[#allocation7_spill] sm:$0xff]  ;;  %v3257_v59 = vld [vmem:[#allocation14_spill] sm:$0xff] }
 0x1e0   :  { %1605 = vpow2.f32 %v1536_v63  ;;  %v1537_v61 = vmul.f32 -1.442695, %v417_v3 }
 0x1e2   :  { %1607 = vpow2.f32 %v1537_v61 }
 0x1e3   :  { %1609 = vpow2.f32 %v1538_v54 }
 0x1ed   :  { %v1606_v46 = vpop.eup %1605 }
 0x1ee   :  { %v429_v9 = vadd.f32 1.0, %v1606_v46 }
 0x1ef   :  { %v1608_v57 = vpop.eup %1607 }
 0x1f0   :  { %1611 = vrcp.f32 %v429_v9  ;;  %v430_v3 = vadd.f32 1.0, %v1608_v57  ;;  %v1610_v63 = vpop.eup %1609  ;;  %v3259_v9 = vld [vmem:[#allocation16_spill] sm:$0xff]  ;;  %v3260_v57 = vld [vmem:[#allocation9_spill] sm:$0xff] }
 0x1f1   :  { %1613 = vtanh.f32 %v419_v0  ;;  %v431_v48 = vadd.f32 1.0, %v1610_v63  ;;  %v3258_v0 = vld [vmem:[#allocation8_spill] sm:$0xff]  ;;  %v3262_v63 = vld [vmem:[#allocation10_spill] sm:$0xff] }
 0x1f2   :  { %1615 = vrcp.f32 %v430_v3  ;;  %v3261_v3 = vld [vmem:[#allocation17_spill] sm:$0xff] }
 0x1f3   :  { %1617 = vrcp.f32 %v431_v48  ;;  %v3266_v48 = vld [vmem:[#allocation13_spill] sm:$0xff] }
 0x1fd   :  { %v1612_v60 = vpop.eup %1611 }
 0x1fe   :  { %v1614_v58 = vpop.eup %1613 }
 0x1ff   :  { %v1616_v61 = vpop.eup %1615  ;;  %v440_v55 = vmul.f32 %v1614_v58, %v1612_v60  ;;  %v3263_v60 = vld [vmem:[#allocation18_spill] sm:$0xff]  ;;  %v3264_v58 = vld [vmem:[#allocation11_spill] sm:$0xff] }
 0x200   :  { %v439_v52 = vmul.f32 %v1616_v61, %v2289_v50  ;;  %v1618_v46 = vpop.eup %1617  ;;  %v3255_v50 = vld [vmem:[#allocation12_spill] sm:$0xff]  ;;  %v3265_v61 = vld [vmem:[#allocation19_spill] sm:$0xff] }
 0x202   :  { %v2374_v44 = vadd.f32 %v440_v55, %v439_v52  ;;  %v3254_v55 = vld [vmem:[#allocation6_spill] sm:$0xff]  ;;  %v3267_v52 = vld [vmem:[#allocation20_spill] sm:$0xff] }
 0x204   :  { %1619 = vtanh.f32 %v2374_v44 }
 0x211   :  { %v1620_v56 = vpop.eup %1619 }
 0x212   :  { %v443_v54 = vmul.f32 %v1620_v56, %v1618_v46  ;;  %v3268_v46 = vld [vmem:[#allocation15_spill] sm:$0xff]  ;;  %v3269_v56 = vmov 0.0  }
 0x214   :  { %1539 = vst [vmem:[%s3145_s4 + $0x8] sm:$0xff] %v443_v54  ;;  %516 = vmatmul.mubr.f32.vlgmr.msra.gmra.mxu0 %v443_v54  ;;  %587 = vmatmul.mubr.f32.vlgmr.msra.gmra.mxu1 %v443_v54  ;;  %v3270_v54 = vld [vmem:[#allocation21_spill] sm:$0xff] }
 0x215   :  { %629 = vmatpush1.msra.mxu0 %v1825_v1  ;;  %700 = vmatpush1.msra.mxu1 %v1879_v11 }
 0x216   :  { %630 = vmatprep.subr.mxu0 %v1830_v2  ;;  %701 = vmatprep.subr.mxu1 %v1891_v13 }
 0x217   :  { %631 = vmatpush1.msra.mxu0 %v1838_v4  ;;  %702 = vmatpush1.msra.mxu1 %v1896_v14 }
 0x218   :  { %632 = vmatprep.subr.mxu0 %v1844_v5  ;;  %703 = vmatprep.subr.mxu1 %v1908_v16 }
 0x219   :  { %633 = vmatpush1.msra.mxu0 %v1850_v6  ;;  %704 = vmatpush1.msra.mxu1 %v1920_v18 }
 0x21a   :  { %634 = vmatprep.subr.mxu0 %v1856_v7  ;;  %705 = vmatprep.subr.mxu1 %v1925_v19 }
 0x21b   :  { %635 = vmatpush1.msra.mxu0 %v1862_v8  ;;  %706 = vmatpush1.msra.mxu1 %v1937_v21 }
 0x21c   :  { %636 = vmatprep.subr.mxu0 %v1873_v10  ;;  %707 = vmatprep.subr.mxu1 %v1949_v23 }
 0x21d   :  { %637 = vmatpush1.msra.mxu0 %v1885_v12  ;;  %708 = vmatpush1.msra.mxu1 %v1961_v25 }
 0x21e   :  { %638 = vmatprep.subr.mxu0 %v1902_v15  ;;  %709 = vmatprep.subr.mxu1 %v1973_v27 }
 0x21f   :  { %639 = vmatpush1.msra.mxu0 %v1914_v17  ;;  %710 = vmatpush1.msra.mxu1 %v1985_v29 }
 0x220   :  { %640 = vmatprep.subr.mxu0 %v1931_v20  ;;  %711 = vmatprep.subr.mxu1 %v1997_v31 }
 0x221   :  { %641 = vmatpush1.msra.mxu0 %v1943_v22  ;;  %712 = vmatpush1.msra.mxu1 %v2009_v33 }
 0x222   :  { %642 = vmatprep.subr.mxu0 %v1955_v24  ;;  %713 = vmatprep.subr.mxu1 %v2021_v35 }
 0x223   :  { %643 = vmatpush1.msra.mxu0 %v1967_v26  ;;  %714 = vmatpush1.msra.mxu1 %v2033_v37 }
 0x224   :  { %644 = vmatprep.subr.mxu0 %v1979_v28  ;;  %715 = vmatprep.subr.mxu1 %v2045_v39 }
 0x225   :  { %645 = vmatpush1.msra.mxu0 %v1991_v30  ;;  %716 = vmatpush1.msra.mxu1 %v2057_v41 }
 0x226   :  { %646 = vmatprep.subr.mxu0 %v2003_v32  ;;  %717 = vmatprep.subr.mxu1 %v2069_v43 }
 0x227   :  { %647 = vmatpush1.msra.mxu0 %v2015_v34  ;;  %718 = vmatpush1.msra.mxu1 %v2081_v45 }
 0x228   :  { %648 = vmatprep.subr.mxu0 %v2027_v36  ;;  %719 = vmatprep.subr.mxu1 %v2093_v47 }
 0x229   :  { %649 = vmatpush1.msra.mxu0 %v2039_v38  ;;  %720 = vmatpush1.msra.mxu1 %v2105_v49 }
 0x22a   :  { %650 = vmatprep.subr.mxu0 %v2051_v40  ;;  %721 = vmatprep.subr.mxu1 %v2117_v51 }
 0x22b   :  { %651 = vmatpush1.msra.mxu0 %v2063_v42  ;;  %722 = vmatpush1.msra.mxu1 %v2129_v53 }
 0x22c   :  { %652 = vmatprep.subr.mxu0 %v3254_v55  ;;  %723 = vmatprep.subr.mxu1 %v3255_v50 }
 0x22d   :  { %653 = vmatpush1.msra.mxu0 %v3256_v62  ;;  %724 = vmatpush1.msra.mxu1 %v3257_v59 }
 0x22e   :  { %654 = vmatprep.subr.mxu0 %v3258_v0  ;;  %725 = vmatprep.subr.mxu1 %v3259_v9  ;;  %v1543_v9 = vld [vmem:[%s3143_s0 + $0x58] sm:$0xff] }
 0x22f   :  { %655 = vmatpush1.msra.mxu0 %v3260_v57  ;;  %726 = vmatpush1.msra.mxu1 %v3261_v3  ;;  %v3271_v3 = vld [vmem:[#allocation4_spill] sm:$0xff] }
 0x230   :  { %656 = vmatprep.subr.mxu0 %v3262_v63  ;;  %727 = vmatprep.subr.mxu1 %v3263_v60  ;;  %v3272_v63 = vld [vmem:[#allocation5_spill] sm:$0xff] }
 0x231   :  { %657 = vmatpush1.msra.mxu0 %v3264_v58  ;;  %728 = vmatpush1.msra.mxu1 %v3265_v61  ;;  %v1540_v61 = vld [vmem:[%s3143_s0 + $0x40] sm:$0xff] }
 0x232   :  { %658 = vmatprep.subr.mxu0 %v3266_v48  ;;  %729 = vmatprep.subr.mxu1 %v3267_v52  ;;  %v1541_v52 = vld [vmem:[%s3143_s0 + $0x48] sm:$0xff] }
 0x233   :  { %659 = vmatpush1.msra.mxu0 %v3268_v46  ;;  %692 = vmatprep.mubr.f32.mxu0 %v3269_v56 }
 0x234   :  { %730 = vmatpush1.msra.mxu1 %v3270_v54  ;;  %763 = vmatprep.mubr.f32.mxu1 %v3269_v56 }
 0x235   :  { %805 = vmatprep.subr.mxu0 %v3271_v3  ;;  %876 = vmatprep.subr.mxu1 %v3272_v63  ;;  %v1542_v3 = vld [vmem:[%s3143_s0 + $0x50] sm:$0xff] }
 0x2d4   :  { %v517_v58 = vpop.f32.mrf.mxu0  ;;  %v588_v63 = vpop.f32.mrf.mxu1 }
 0x2d5   :  { %v593_v46 = vadd.f32 %v1540_v61, %v517_v58  ;;  %v595_v56 = vadd.f32 %v1542_v3, %v588_v63 }
 0x2d6   :  { %v519_v48 = vpop.f32.mrf.mxu0  ;;  %v590_v0 = vpop.f32.mrf.mxu1 }
 0x2d7   :  { %v1544_v60 = vmul.f32 -1.442695, %v593_v46  ;;  %v594_v57 = vadd.f32 %v1541_v52, %v519_v48  ;;  %v1546_v59 = vmul.f32 -1.442695, %v595_v56  ;;  %v596_v58 = vadd.f32 %v1543_v9, %v590_v0  ;;  %v2558_v56 = vld [vmem:[%s3141_s3 + $0x1e0] sm:$0xff] }
 0x2d9   :  { %1621 = vpow2.f32 %v1544_v60  ;;  %v1545_v54 = vmul.f32 -1.442695, %v594_v57 }
 0x2db   :  { %1623 = vpow2.f32 %v1545_v54 }
 0x2dc   :  { %1625 = vpow2.f32 %v1546_v59 }
 0x2e6   :  { %v1622_v62 = vpop.eup %1621 }
 0x2e7   :  { %v606_v61 = vadd.f32 1.0, %v1622_v62 }
 0x2e8   :  { %v1624_v46 = vpop.eup %1623 }
 0x2e9   :  { %1627 = vrcp.f32 %v606_v61  ;;  %v607_v57 = vadd.f32 1.0, %v1624_v46  ;;  %v1626_v60 = vpop.eup %1625  ;;  %v2576_v61 = vld [vmem:[%s3141_s3 + $0x1d8] sm:$0xff]  ;;  %v2582_v46 = vld [vmem:[%s3141_s3 + $0x1c0] sm:$0xff] }
 0x2ea   :  { %1629 = vtanh.f32 %v596_v58  ;;  %v608_v63 = vadd.f32 1.0, %v1626_v60  ;;  %v2570_v58 = vld [vmem:[%s3141_s3 + $0x1c8] sm:$0xff] }
 0x2eb   :  { %1631 = vrcp.f32 %v607_v57  ;;  %v2588_v57 = vld [vmem:[%s3141_s3 + $0x1d0] sm:$0xff]  ;;  %v2594_v60 = vld [vmem:[%s3141_s3 + $0x1a8] sm:$0xff] }
 0x2ec   :  { %1633 = vrcp.f32 %v608_v63  ;;  %v2618_v63 = vld [vmem:[%s3141_s3 + $0x188] sm:$0xff] }
 0x2f6   :  { %v1628_v48 = vpop.eup %1627 }
 0x2f7   :  { %v1630_v52 = vpop.eup %1629 }
 0x2f8   :  { %v1632_v54 = vpop.eup %1631  ;;  %v617_v50 = vmul.f32 %v1630_v52, %v1628_v48  ;;  %v2600_v48 = vld [vmem:[%s3141_s3 + $0x1b8] sm:$0xff]  ;;  %v2606_v52 = vld [vmem:[%s3141_s3 + $0x1a0] sm:$0xff] }
 0x2f9   :  { %v616_v3 = vmul.f32 %v1632_v54, %v2374_v44  ;;  %v1634_v62 = vpop.eup %1633  ;;  %v2612_v54 = vld [vmem:[%s3141_s3 + $0x1b0] sm:$0xff] }
 0x2fb   :  { %v2459_v55 = vadd.f32 %v617_v50, %v616_v3  ;;  %v2624_v3 = vld [vmem:[%s3141_s3 + $0x198] sm:$0xff] }
 0x2fd   :  { %1635 = vtanh.f32 %v2459_v55 }
 0x30a   :  { %v1636_v0 = vpop.eup %1635 }
 0x30b   :  { %v620_v59 = vmul.f32 %v1636_v0, %v1634_v62  ;;  %v2630_v62 = vld [vmem:[%s3141_s3 + $0x180] sm:$0xff]  ;;  %v2636_v0 = vld [vmem:[%s3141_s3 + $0x190] sm:$0xff] }
 0x30d   :  { %1547 = vst [vmem:[%s3145_s4 + $0x10] sm:$0xff] %v620_v59  ;;  %693 = vmatmul.mubr.f32.vlgmr.msra.gmra.mxu0 %v620_v59  ;;  %764 = vmatmul.mubr.f32.vlgmr.msra.gmra.mxu1 %v620_v59  ;;  %v2642_v59 = vld [vmem:[%s3141_s3 + $0x168] sm:$0xff] }
 0x30e   :  { %806 = vmatpush1.msra.mxu0 %v1825_v1  ;;  %877 = vmatpush1.msra.mxu1 %v1879_v11  ;;  %v3273_v1 = vld [vmem:[#allocation6_spill] sm:$0xff] }
 0x30f   :  { %807 = vmatprep.subr.mxu0 %v1830_v2  ;;  %878 = vmatprep.subr.mxu1 %v1891_v13  ;;  %v3274_v2 = vld [vmem:[#allocation12_spill] sm:$0xff]  ;;  %v3281_v11 = vld [vmem:[#allocation10_spill] sm:$0xff]  ;;  %v3283_v13 = vld [vmem:[#allocation11_spill] sm:$0xff] }
 0x310   :  { %808 = vmatpush1.msra.mxu0 %v1838_v4  ;;  %879 = vmatpush1.msra.mxu1 %v1896_v14  ;;  %v3275_v4 = vld [vmem:[#allocation7_spill] sm:$0xff] }
 0x311   :  { %809 = vmatprep.subr.mxu0 %v1844_v5  ;;  %880 = vmatprep.subr.mxu1 %v1908_v16  ;;  %v3276_v5 = vld [vmem:[#allocation14_spill] sm:$0xff]  ;;  %v3284_v14 = vld [vmem:[#allocation19_spill] sm:$0xff]  ;;  %v3286_v16 = vld [vmem:[#allocation20_spill] sm:$0xff] }
 0x312   :  { %810 = vmatpush1.msra.mxu0 %v1850_v6  ;;  %881 = vmatpush1.msra.mxu1 %v1920_v18  ;;  %v3277_v6 = vld [vmem:[#allocation8_spill] sm:$0xff]  ;;  %v3288_v18 = vmov 0.0  }
 0x313   :  { %811 = vmatprep.subr.mxu0 %v1856_v7  ;;  %882 = vmatprep.subr.mxu1 %v1925_v19  ;;  %v3278_v7 = vld [vmem:[#allocation16_spill] sm:$0xff]  ;;  %v3289_v19 = vld [vmem:[#allocation21_spill] sm:$0xff] }
 0x314   :  { %812 = vmatpush1.msra.mxu0 %v1862_v8  ;;  %883 = vmatpush1.msra.mxu1 %v1937_v21  ;;  %v3279_v8 = vld [vmem:[#allocation9_spill] sm:$0xff] }
 0x315   :  { %813 = vmatprep.subr.mxu0 %v1873_v10  ;;  %884 = vmatprep.subr.mxu1 %v1949_v23  ;;  %v3280_v10 = vld [vmem:[#allocation17_spill] sm:$0xff] }
 0x316   :  { %814 = vmatpush1.msra.mxu0 %v1885_v12  ;;  %885 = vmatpush1.msra.mxu1 %v1961_v25  ;;  %v3282_v12 = vld [vmem:[#allocation18_spill] sm:$0xff]  ;;  %v3291_v21 = vld [vmem:[#allocation5_spill] sm:$0xff] }
 0x317   :  { %815 = vmatprep.subr.mxu0 %v1902_v15  ;;  %886 = vmatprep.subr.mxu1 %v1973_v27  ;;  %v3285_v15 = vld [vmem:[#allocation13_spill] sm:$0xff] }
 0x318   :  { %816 = vmatpush1.msra.mxu0 %v1914_v17  ;;  %887 = vmatpush1.msra.mxu1 %v1985_v29  ;;  %v3287_v17 = vld [vmem:[#allocation15_spill] sm:$0xff] }
 0x319   :  { %817 = vmatprep.subr.mxu0 %v1931_v20  ;;  %888 = vmatprep.subr.mxu1 %v1997_v31  ;;  %v2532_v20 = vld [vmem:[%s3141_s3 + $0x1e8] sm:$0xff] }
 0x31a   :  { %818 = vmatpush1.msra.mxu0 %v1943_v22  ;;  %889 = vmatpush1.msra.mxu1 %v2009_v33  ;;  %3290 = vst [vmem:[#allocation4_spill] sm:$0xff] %v2532_v20  ;;  %v1548_v22 = vld [vmem:[%s3143_s0 + $0x60] sm:$0xff]  ;;  %v1551_v33 = vld [vmem:[%s3143_s0 + $0x78] sm:$0xff] }
 0x31b   :  { %819 = vmatprep.subr.mxu0 %v1955_v24  ;;  %890 = vmatprep.subr.mxu1 %v2021_v35  ;;  %v1549_v24 = vld [vmem:[%s3143_s0 + $0x68] sm:$0xff] }
 0x31c   :  { %820 = vmatpush1.msra.mxu0 %v1967_v26  ;;  %891 = vmatpush1.msra.mxu1 %v2033_v37 }
 0x31d   :  { %821 = vmatprep.subr.mxu0 %v1979_v28  ;;  %892 = vmatprep.subr.mxu1 %v2045_v39 }
 0x31e   :  { %822 = vmatpush1.msra.mxu0 %v1991_v30  ;;  %893 = vmatpush1.msra.mxu1 %v2057_v41  ;;  %v1550_v30 = vld [vmem:[%s3143_s0 + $0x70] sm:$0xff] }
 0x31f   :  { %823 = vmatprep.subr.mxu0 %v2003_v32  ;;  %894 = vmatprep.subr.mxu1 %v2069_v43 }
 0x320   :  { %824 = vmatpush1.msra.mxu0 %v2015_v34  ;;  %895 = vmatpush1.msra.mxu1 %v2081_v45 }
 0x321   :  { %825 = vmatprep.subr.mxu0 %v2027_v36  ;;  %896 = vmatprep.subr.mxu1 %v2093_v47 }
 0x322   :  { %826 = vmatpush1.msra.mxu0 %v2039_v38  ;;  %897 = vmatpush1.msra.mxu1 %v2105_v49 }
 0x323   :  { %827 = vmatprep.subr.mxu0 %v2051_v40  ;;  %898 = vmatprep.subr.mxu1 %v2117_v51 }
 0x324   :  { %828 = vmatpush1.msra.mxu0 %v2063_v42  ;;  %899 = vmatpush1.msra.mxu1 %v2129_v53 }
 0x325   :  { %829 = vmatprep.subr.mxu0 %v3273_v1  ;;  %900 = vmatprep.subr.mxu1 %v3274_v2  ;;  %v2648_v1 = vld [vmem:[%s3141_s3 + $0x178] sm:$0xff] }
 0x326   :  { %830 = vmatpush1.msra.mxu0 %v3275_v4  ;;  %901 = vmatpush1.msra.mxu1 %v3276_v5  ;;  %v2654_v4 = vld [vmem:[%s3141_s3 + $0x160] sm:$0xff] }
 0x327   :  { %831 = vmatprep.subr.mxu0 %v3277_v6  ;;  %902 = vmatprep.subr.mxu1 %v3278_v7  ;;  %v2660_v6 = vld [vmem:[%s3141_s3 + $0x170] sm:$0xff] }
 0x328   :  { %832 = vmatpush1.msra.mxu0 %v3279_v8  ;;  %903 = vmatpush1.msra.mxu1 %v3280_v10  ;;  %v2666_v8 = vld [vmem:[%s3141_s3 + $0x148] sm:$0xff] }
 0x329   :  { %833 = vmatprep.subr.mxu0 %v3281_v11  ;;  %904 = vmatprep.subr.mxu1 %v3282_v12  ;;  %v2672_v11 = vld [vmem:[%s3141_s3 + $0x158] sm:$0xff] }
 0x32a   :  { %834 = vmatpush1.msra.mxu0 %v3283_v13  ;;  %905 = vmatpush1.msra.mxu1 %v3284_v14  ;;  %v2678_v13 = vld [vmem:[%s3141_s3 + $0x140] sm:$0xff] }
 0x32b   :  { %835 = vmatprep.subr.mxu0 %v3285_v15  ;;  %906 = vmatprep.subr.mxu1 %v3286_v16  ;;  %v2684_v15 = vld [vmem:[%s3141_s3 + $0x150] sm:$0xff] }
 0x32c   :  { %836 = vmatpush1.msra.mxu0 %v3287_v17  ;;  %869 = vmatprep.mubr.f32.mxu0 %v3288_v18  ;;  %v2690_v17 = vld [vmem:[%s3141_s3 + $0x128] sm:$0xff] }
 0x32d   :  { %907 = vmatpush1.msra.mxu1 %v3289_v19  ;;  %940 = vmatprep.mubr.f32.mxu1 %v3288_v18 }
 0x32e   :  { %982 = vmatprep.subr.mxu0 %v2532_v20  ;;  %1053 = vmatprep.subr.mxu1 %v3291_v21  ;;  %v2696_v21 = vld [vmem:[%s3141_s3 + $0x138] sm:$0xff] }
 0x3cd   :  { %v694_v23 = vpop.f32.mrf.mxu0  ;;  %v765_v31 = vpop.f32.mrf.mxu1 }
 0x3ce   :  { %v770_v25 = vadd.f32 %v1548_v22, %v694_v23  ;;  %v772_v32 = vadd.f32 %v1550_v30, %v765_v31  ;;  %v2702_v22 = vld [vmem:[%s3141_s3 + $0x120] sm:$0xff]  ;;  %v2708_v23 = vld [vmem:[%s3141_s3 + $0x130] sm:$0xff] }
 0x3cf   :  { %v696_v26 = vpop.f32.mrf.mxu0  ;;  %v767_v34 = vpop.f32.mrf.mxu1  ;;  %v2750_v30 = vld [vmem:[%s3141_s3 + $0xe0] sm:$0xff]  ;;  %v2756_v31 = vld [vmem:[%s3141_s3 + $0xf0] sm:$0xff] }
 0x3d0   :  { %v1552_v27 = vmul.f32 -1.442695, %v770_v25  ;;  %v771_v28 = vadd.f32 %v1549_v24, %v696_v26  ;;  %v1554_v35 = vmul.f32 -1.442695, %v772_v32  ;;  %v773_v37 = vadd.f32 %v1551_v33, %v767_v34  ;;  %v2714_v24 = vld [vmem:[%s3141_s3 + $0x108] sm:$0xff]  ;;  %v2720_v25 = vld [vmem:[%s3141_s3 + $0x118] sm:$0xff] }
 0x3d1   :  { %v2726_v26 = vld [vmem:[%s3141_s3 + $0x100] sm:$0xff]  ;;  %v2762_v32 = vld [vmem:[%s3141_s3 + $0xc8] sm:$0xff]  ;;  %v2768_v33 = vld [vmem:[%s3141_s3 + $0xd8] sm:$0xff] }
 0x3d2   :  { %1637 = vpow2.f32 %v1552_v27  ;;  %v1553_v29 = vmul.f32 -1.442695, %v771_v28  ;;  %v2732_v27 = vld [vmem:[%s3141_s3 + $0x110] sm:$0xff]  ;;  %v2738_v28 = vld [vmem:[%s3141_s3 + $0xe8] sm:$0xff]  ;;  %v2774_v34 = vld [vmem:[%s3141_s3 + $0xc0] sm:$0xff] }
 0x3d4   :  { %1639 = vpow2.f32 %v1553_v29  ;;  %v2744_v29 = vld [vmem:[%s3141_s3 + $0xf8] sm:$0xff] }
 0x3d5   :  { %1641 = vpow2.f32 %v1554_v35  ;;  %v2780_v35 = vld [vmem:[%s3141_s3 + $0xd0] sm:$0xff] }
 0x3df   :  { %v1638_v36 = vpop.eup %1637 }
 0x3e0   :  { %v783_v38 = vadd.f32 1.0, %v1638_v36  ;;  %v2786_v36 = vld [vmem:[%s3141_s3 + $0xa8] sm:$0xff] }
 0x3e1   :  { %v1640_v39 = vpop.eup %1639 }
 0x3e2   :  { %1643 = vrcp.f32 %v783_v38  ;;  %v784_v40 = vadd.f32 1.0, %v1640_v39  ;;  %v1642_v41 = vpop.eup %1641  ;;  %v2798_v38 = vld [vmem:[%s3141_s3 + $0xa0] sm:$0xff]  ;;  %v2804_v39 = vld [vmem:[%s3141_s3 + $0xb0] sm:$0xff] }
 0x3e3   :  { %1645 = vtanh.f32 %v773_v37  ;;  %v785_v45 = vadd.f32 1.0, %v1642_v41  ;;  %v2792_v37 = vld [vmem:[%s3141_s3 + $0xb8] sm:$0xff] }
 0x3e4   :  { %1647 = vrcp.f32 %v784_v40  ;;  %v2810_v40 = vld [vmem:[%s3141_s3 + $0x88] sm:$0xff]  ;;  %v2816_v41 = vld [vmem:[%s3141_s3 + $0x98] sm:$0xff] }
 0x3e5   :  { %1649 = vrcp.f32 %v785_v45  ;;  %v2841_v45 = vld [vmem:[%s3141_s3 + $0x60] sm:$0xff] }
 0x3e6   :  { %3293 = vst [vmem:[#allocation12_spill] sm:$0xff] %v2841_v45 }
 0x3ef   :  { %v1644_v42 = vpop.eup %1643 }
 0x3f0   :  { %v1646_v43 = vpop.eup %1645 }
 0x3f1   :  { %v1648_v44 = vpop.eup %1647  ;;  %v794_v49 = vmul.f32 %v1646_v43, %v1644_v42  ;;  %v2822_v42 = vld [vmem:[%s3141_s3 + $0x80] sm:$0xff]  ;;  %v2828_v43 = vld [vmem:[%s3141_s3 + $0x90] sm:$0xff] }
 0x3f2   :  { %v793_v47 = vmul.f32 %v1648_v44, %v2459_v55  ;;  %v1650_v53 = vpop.eup %1649  ;;  %v2564_v55 = vld [vmem:[%s3141_s3 + $0x1f0] sm:$0xff]  ;;  %v2834_v44 = vld [vmem:[%s3141_s3 + $0x68] sm:$0xff] }
 0x3f3   :  { %3292 = vst [vmem:[#allocation6_spill] sm:$0xff] %v2834_v44 }
 0x3f4   :  { %v2549_v51 = vadd.f32 %v794_v49, %v793_v47  ;;  %v2848_v47 = vld [vmem:[%s3141_s3 + $0x48] sm:$0xff] }
 0x3f5   :  { %3294 = vst [vmem:[#allocation7_spill] sm:$0xff] %v2848_v47 }
 0x3f6   :  { %1651 = vtanh.f32 %v2549_v51 }
 0x403   :  { %v1652_v50 = vpop.eup %1651 }
 0x404   :  { %v797_v9 = vmul.f32 %v1652_v50, %v1650_v53 }
 0x406   :  { %1555 = vst [vmem:[%s3145_s4 + $0x18] sm:$0xff] %v797_v9  ;;  %870 = vmatmul.mubr.f32.vlgmr.msra.gmra.mxu0 %v797_v9  ;;  %941 = vmatmul.mubr.f32.vlgmr.msra.gmra.mxu1 %v797_v9 }
 0x407   :  { %983 = vmatpush1.msra.mxu0 %v2558_v56  ;;  %1054 = vmatpush1.msra.mxu1 %v2564_v55 }
 0x408   :  { %984 = vmatprep.subr.mxu0 %v2570_v58  ;;  %1055 = vmatprep.subr.mxu1 %v2576_v61 }
 0x409   :  { %985 = vmatpush1.msra.mxu0 %v2582_v46  ;;  %1056 = vmatpush1.msra.mxu1 %v2588_v57 }
 0x40a   :  { %986 = vmatprep.subr.mxu0 %v2594_v60  ;;  %1057 = vmatprep.subr.mxu1 %v2600_v48 }
 0x40b   :  { %987 = vmatpush1.msra.mxu0 %v2606_v52  ;;  %1058 = vmatpush1.msra.mxu1 %v2612_v54 }
 0x40c   :  { %988 = vmatprep.subr.mxu0 %v2618_v63  ;;  %1059 = vmatprep.subr.mxu1 %v2624_v3 }
 0x40d   :  { %989 = vmatpush1.msra.mxu0 %v2630_v62  ;;  %1060 = vmatpush1.msra.mxu1 %v2636_v0 }
 0x40e   :  { %990 = vmatprep.subr.mxu0 %v2642_v59  ;;  %1061 = vmatprep.subr.mxu1 %v2648_v1 }
 0x40f   :  { %991 = vmatpush1.msra.mxu0 %v2654_v4  ;;  %1062 = vmatpush1.msra.mxu1 %v2660_v6 }
 0x410   :  { %992 = vmatprep.subr.mxu0 %v2666_v8  ;;  %1063 = vmatprep.subr.mxu1 %v2672_v11 }
 0x411   :  { %993 = vmatpush1.msra.mxu0 %v2678_v13  ;;  %1064 = vmatpush1.msra.mxu1 %v2684_v15 }
 0x412   :  { %994 = vmatprep.subr.mxu0 %v2690_v17  ;;  %1065 = vmatprep.subr.mxu1 %v2696_v21 }
 0x413   :  { %995 = vmatpush1.msra.mxu0 %v2702_v22  ;;  %1066 = vmatpush1.msra.mxu1 %v2708_v23 }
 0x414   :  { %996 = vmatprep.subr.mxu0 %v2714_v24  ;;  %1067 = vmatprep.subr.mxu1 %v2720_v25 }
 0x415   :  { %997 = vmatpush1.msra.mxu0 %v2726_v26  ;;  %1068 = vmatpush1.msra.mxu1 %v2732_v27 }
 0x416   :  { %998 = vmatprep.subr.mxu0 %v2738_v28  ;;  %1069 = vmatprep.subr.mxu1 %v2744_v29 }
 0x417   :  { %999 = vmatpush1.msra.mxu0 %v2750_v30  ;;  %1070 = vmatpush1.msra.mxu1 %v2756_v31 }
 0x418   :  { %1000 = vmatprep.subr.mxu0 %v2762_v32  ;;  %1071 = vmatprep.subr.mxu1 %v2768_v33 }
 0x419   :  { %1001 = vmatpush1.msra.mxu0 %v2774_v34  ;;  %1072 = vmatpush1.msra.mxu1 %v2780_v35 }
 0x41a   :  { %1002 = vmatprep.subr.mxu0 %v2786_v36  ;;  %1073 = vmatprep.subr.mxu1 %v2792_v37 }
 0x41b   :  { %1003 = vmatpush1.msra.mxu0 %v2798_v38  ;;  %1074 = vmatpush1.msra.mxu1 %v2804_v39 }
 0x41c   :  { %1004 = vmatprep.subr.mxu0 %v2810_v40  ;;  %1075 = vmatprep.subr.mxu1 %v2816_v41 }
 0x41d   :  { %1005 = vmatpush1.msra.mxu0 %v2822_v42  ;;  %1076 = vmatpush1.msra.mxu1 %v2828_v43 }
 0x41e   :  { %1006 = vmatprep.subr.mxu0 %v2834_v44  ;;  %1077 = vmatprep.subr.mxu1 %v3274_v2  ;;  %v2855_v2 = vld [vmem:[%s3141_s3 + $0x40] sm:$0xff] }
 0x41f   :  { %1007 = vmatpush1.msra.mxu0 %v2841_v45  ;;  %1078 = vmatpush1.msra.mxu1 %v3276_v5  ;;  %3295 = vst [vmem:[#allocation14_spill] sm:$0xff] %v2855_v2  ;;  %v2862_v5 = vld [vmem:[%s3141_s3 + $0x28] sm:$0xff] }
 0x420   :  { %1008 = vmatprep.subr.mxu0 %v2848_v47  ;;  %1079 = vmatprep.subr.mxu1 %v3278_v7  ;;  %3296 = vst [vmem:[#allocation8_spill] sm:$0xff] %v2862_v5  ;;  %v2869_v7 = vld [vmem:[%s3141_s3 + $0x20] sm:$0xff] }
 0x421   :  { %1009 = vmatpush1.msra.mxu0 %v2855_v2  ;;  %1080 = vmatpush1.msra.mxu1 %v3280_v10  ;;  %3297 = vst [vmem:[#allocation16_spill] sm:$0xff] %v2869_v7  ;;  %v2876_v10 = vld [vmem:[%s3141_s3 + $0x8] sm:$0xff] }
 0x422   :  { %1010 = vmatprep.subr.mxu0 %v2862_v5  ;;  %1081 = vmatprep.subr.mxu1 %v3282_v12  ;;  %3298 = vst [vmem:[#allocation9_spill] sm:$0xff] %v2876_v10  ;;  %v2883_v12 = vld [vmem:[%s3141_s3] sm:$0xff] }
 0x423   :  { %1011 = vmatpush1.msra.mxu0 %v2869_v7  ;;  %1082 = vmatpush1.msra.mxu1 %v3284_v14  ;;  %3299 = vst [vmem:[#allocation17_spill] sm:$0xff] %v2883_v12  ;;  %v2893_v14 = vld [vmem:[%s3141_s3 + $0x1f8] sm:$0xff] }
 0x424   :  { %1012 = vmatprep.subr.mxu0 %v2876_v10  ;;  %1083 = vmatprep.subr.mxu1 %v3286_v16  ;;  %3300 = vst [vmem:[#allocation10_spill] sm:$0xff] %v2893_v14  ;;  %v1556_v16 = vld [vmem:[%s3143_s0 + $0x80] sm:$0xff]  ;;  %v1559_v7 = vld [vmem:[%s3143_s0 + $0x98] sm:$0xff] }
 0x425   :  { %1013 = vmatpush1.msra.mxu0 %v2883_v12  ;;  %1046 = vmatprep.mubr.f32.mxu0 %v3288_v18 }
 0x426   :  { %1084 = vmatpush1.msra.mxu1 %v3289_v19  ;;  %1117 = vmatprep.mubr.f32.mxu1 %v3288_v18  ;;  %v1557_v19 = vld [vmem:[%s3143_s0 + $0x88] sm:$0xff] }
 0x427   :  { %1159 = vmatprep.subr.mxu0 %v2532_v20  ;;  %1230 = vmatprep.subr.mxu1 %v2893_v14  ;;  %v1558_v14 = vld [vmem:[%s3143_s0 + $0x90] sm:$0xff] }
 0x4c6   :  { %v871_v49 = vpop.f32.mrf.mxu0  ;;  %v942_v12 = vpop.f32.mrf.mxu1 }
 0x4c7   :  { %v947_v53 = vadd.f32 %v1556_v16, %v871_v49  ;;  %v949_v10 = vadd.f32 %v1558_v14, %v942_v12 }
 0x4c8   :  { %v873_v50 = vpop.f32.mrf.mxu0  ;;  %v944_v5 = vpop.f32.mrf.mxu1 }
 0x4c9   :  { %v1560_v9 = vmul.f32 -1.442695, %v947_v53  ;;  %v948_v20 = vadd.f32 %v1557_v19, %v873_v50  ;;  %v1562_v2 = vmul.f32 -1.442695, %v949_v10  ;;  %v950_v16 = vadd.f32 %v1559_v7, %v944_v5  ;;  %v3303_v7 = vld [vmem:[#allocation12_spill] sm:$0xff]  ;;  %v2972_v10 = vld [vmem:[%s3141_s3 + $0x70] sm:$0xff] }
 0x4ca   :  { %3304 = vst [vmem:[#allocation11_spill] sm:$0xff] %v2972_v10 }
 0x4cb   :  { %1653 = vpow2.f32 %v1560_v9  ;;  %v1561_v18 = vmul.f32 -1.442695, %v948_v20 }
 0x4cd   :  { %1655 = vpow2.f32 %v1561_v18 }
 0x4ce   :  { %1657 = vpow2.f32 %v1562_v2 }
 0x4d8   :  { %v1654_v47 = vpop.eup %1653 }
 0x4d9   :  { %v960_v49 = vadd.f32 1.0, %v1654_v47 }
 0x4da   :  { %v1656_v53 = vpop.eup %1655 }
 0x4db   :  { %1659 = vrcp.f32 %v960_v49  ;;  %v961_v20 = vadd.f32 1.0, %v1656_v53  ;;  %v1658_v18 = vpop.eup %1657  ;;  %v2979_v49 = vld [vmem:[%s3141_s3 + $0x58] sm:$0xff]  ;;  %v3307_v53 = vld [vmem:[#allocation14_spill] sm:$0xff] }
 0x4dc   :  { %1661 = vtanh.f32 %v950_v16  ;;  %v962_v12 = vadd.f32 1.0, %v1658_v18  ;;  %v3305_v16 = vld [vmem:[#allocation7_spill] sm:$0xff]  ;;  %3306 = vst [vmem:[#allocation19_spill] sm:$0xff] %v2979_v49  ;;  %v3309_v18 = vld [vmem:[#allocation8_spill] sm:$0xff] }
 0x4dd   :  { %1663 = vrcp.f32 %v961_v20  ;;  %v2986_v20 = vld [vmem:[%s3141_s3 + $0x50] sm:$0xff] }
 0x4de   :  { %1665 = vrcp.f32 %v962_v12  ;;  %3308 = vst [vmem:[#allocation13_spill] sm:$0xff] %v2986_v20  ;;  %v3313_v12 = vld [vmem:[#allocation9_spill] sm:$0xff] }
 0x4e8   :  { %v1660_v19 = vpop.eup %1659 }
 0x4e9   :  { %v1662_v50 = vpop.eup %1661 }
 0x4ea   :  { %v1664_v9 = vpop.eup %1663  ;;  %v971_v45 = vmul.f32 %v1662_v50, %v1660_v19  ;;  %v2993_v19 = vld [vmem:[%s3141_s3 + $0x38] sm:$0xff]  ;;  %v3311_v50 = vld [vmem:[#allocation16_spill] sm:$0xff] }
 0x4eb   :  { %v970_v14 = vmul.f32 %v1664_v9, %v2549_v51  ;;  %v1666_v47 = vpop.eup %1665  ;;  %v3301_v51 = vld [vmem:[#allocation6_spill] sm:$0xff]  ;;  %3310 = vst [vmem:[#allocation20_spill] sm:$0xff] %v2993_v19 }
 0x4ec   :  { %v3000_v9 = vld [vmem:[%s3141_s3 + $0x30] sm:$0xff] }
 0x4ed   :  { %v2909_v44 = vadd.f32 %v971_v45, %v970_v14  ;;  %v2965_v45 = vld [vmem:[%s3141_s3 + $0x78] sm:$0xff]  ;;  %3312 = vst [vmem:[#allocation15_spill] sm:$0xff] %v3000_v9 }
 0x4ee   :  { %3302 = vst [vmem:[#allocation18_spill] sm:$0xff] %v2965_v45  ;;  %v3007_v14 = vld [vmem:[%s3141_s3 + $0x18] sm:$0xff] }
 0x4ef   :  { %1667 = vtanh.f32 %v2909_v44  ;;  %3314 = vst [vmem:[#allocation21_spill] sm:$0xff] %v3007_v14 }
 0x4fc   :  { %v1668_v5 = vpop.eup %1667 }
 0x4fd   :  { %v974_v2 = vmul.f32 %v1668_v5, %v1666_v47  ;;  %v3315_v47 = vld [vmem:[#allocation17_spill] sm:$0xff]  ;;  %v3316_v5 = vmov 0.0  }
 0x4ff   :  { %1563 = vst [vmem:[%s3145_s4 + $0x20] sm:$0xff] %v974_v2  ;;  %1047 = vmatmul.mubr.f32.vlgmr.msra.gmra.mxu0 %v974_v2  ;;  %1118 = vmatmul.mubr.f32.vlgmr.msra.gmra.mxu1 %v974_v2  ;;  %v3015_v2 = vld [vmem:[%s3141_s3 + $0x10] sm:$0xff] }
 0x500   :  { %1160 = vmatpush1.msra.mxu0 %v2558_v56  ;;  %1231 = vmatpush1.msra.mxu1 %v2564_v55  ;;  %3317 = vst [vmem:[#allocation5_spill] sm:$0xff] %v3015_v2 }
 0x501   :  { %1161 = vmatprep.subr.mxu0 %v2570_v58  ;;  %1232 = vmatprep.subr.mxu1 %v2576_v61 }
 0x502   :  { %1162 = vmatpush1.msra.mxu0 %v2582_v46  ;;  %1233 = vmatpush1.msra.mxu1 %v2588_v57 }
 0x503   :  { %1163 = vmatprep.subr.mxu0 %v2594_v60  ;;  %1234 = vmatprep.subr.mxu1 %v2600_v48 }
 0x504   :  { %1164 = vmatpush1.msra.mxu0 %v2606_v52  ;;  %1235 = vmatpush1.msra.mxu1 %v2612_v54 }
 0x505   :  { %1165 = vmatprep.subr.mxu0 %v2618_v63  ;;  %1236 = vmatprep.subr.mxu1 %v2624_v3 }
 0x506   :  { %1166 = vmatpush1.msra.mxu0 %v2630_v62  ;;  %1237 = vmatpush1.msra.mxu1 %v2636_v0 }
 0x507   :  { %1167 = vmatprep.subr.mxu0 %v2642_v59  ;;  %1238 = vmatprep.subr.mxu1 %v2648_v1 }
 0x508   :  { %1168 = vmatpush1.msra.mxu0 %v2654_v4  ;;  %1239 = vmatpush1.msra.mxu1 %v2660_v6 }
 0x509   :  { %1169 = vmatprep.subr.mxu0 %v2666_v8  ;;  %1240 = vmatprep.subr.mxu1 %v2672_v11 }
 0x50a   :  { %1170 = vmatpush1.msra.mxu0 %v2678_v13  ;;  %1241 = vmatpush1.msra.mxu1 %v2684_v15 }
 0x50b   :  { %1171 = vmatprep.subr.mxu0 %v2690_v17  ;;  %1242 = vmatprep.subr.mxu1 %v2696_v21 }
 0x50c   :  { %1172 = vmatpush1.msra.mxu0 %v2702_v22  ;;  %1243 = vmatpush1.msra.mxu1 %v2708_v23 }
 0x50d   :  { %1173 = vmatprep.subr.mxu0 %v2714_v24  ;;  %1244 = vmatprep.subr.mxu1 %v2720_v25 }
 0x50e   :  { %1174 = vmatpush1.msra.mxu0 %v2726_v26  ;;  %1245 = vmatpush1.msra.mxu1 %v2732_v27 }
 0x50f   :  { %1175 = vmatprep.subr.mxu0 %v2738_v28  ;;  %1246 = vmatprep.subr.mxu1 %v2744_v29 }
 0x510   :  { %1176 = vmatpush1.msra.mxu0 %v2750_v30  ;;  %1247 = vmatpush1.msra.mxu1 %v2756_v31 }
 0x511   :  { %1177 = vmatprep.subr.mxu0 %v2762_v32  ;;  %1248 = vmatprep.subr.mxu1 %v2768_v33 }
 0x512   :  { %1178 = vmatpush1.msra.mxu0 %v2774_v34  ;;  %1249 = vmatpush1.msra.mxu1 %v2780_v35 }
 0x513   :  { %1179 = vmatprep.subr.mxu0 %v2786_v36  ;;  %1250 = vmatprep.subr.mxu1 %v2792_v37 }
 0x514   :  { %1180 = vmatpush1.msra.mxu0 %v2798_v38  ;;  %1251 = vmatpush1.msra.mxu1 %v2804_v39 }
 0x515   :  { %1181 = vmatprep.subr.mxu0 %v2810_v40  ;;  %1252 = vmatprep.subr.mxu1 %v2816_v41 }
 0x516   :  { %1182 = vmatpush1.msra.mxu0 %v2822_v42  ;;  %1253 = vmatpush1.msra.mxu1 %v2828_v43 }
 0x517   :  { %1183 = vmatprep.subr.mxu0 %v3301_v51  ;;  %1254 = vmatprep.subr.mxu1 %v2965_v45 }
 0x518   :  { %1184 = vmatpush1.msra.mxu0 %v3303_v7  ;;  %1255 = vmatpush1.msra.mxu1 %v2972_v10 }
 0x519   :  { %1185 = vmatprep.subr.mxu0 %v3305_v16  ;;  %1256 = vmatprep.subr.mxu1 %v2979_v49  ;;  %v1567_v49 = vld [vmem:[%s3143_s0 + $0xb8] sm:$0xff] }
 0x51a   :  { %1186 = vmatpush1.msra.mxu0 %v3307_v53  ;;  %1257 = vmatpush1.msra.mxu1 %v2986_v20 }
 0x51b   :  { %1187 = vmatprep.subr.mxu0 %v3309_v18  ;;  %1258 = vmatprep.subr.mxu1 %v2993_v19 }
 0x51c   :  { %1188 = vmatpush1.msra.mxu0 %v3311_v50  ;;  %1259 = vmatpush1.msra.mxu1 %v3000_v9  ;;  %v3319_v9 = vld [vmem:[#allocation10_spill] sm:$0xff]  ;;  %v1565_v50 = vld [vmem:[%s3143_s0 + $0xa8] sm:$0xff] }
 0x51d   :  { %1189 = vmatprep.subr.mxu0 %v3313_v12  ;;  %1260 = vmatprep.subr.mxu1 %v3007_v14  ;;  %v3318_v12 = vld [vmem:[#allocation4_spill] sm:$0xff] }
 0x51e   :  { %1190 = vmatpush1.msra.mxu0 %v3315_v47  ;;  %1223 = vmatprep.mubr.f32.mxu0 %v3316_v5  ;;  %v1564_v14 = vld [vmem:[%s3143_s0 + $0xa0] sm:$0xff] }
 0x51f   :  { %1261 = vmatpush1.msra.mxu1 %v3015_v2  ;;  %1294 = vmatprep.mubr.f32.mxu1 %v3316_v5 }
 0x520   :  { %1336 = vmatprep.subr.mxu0 %v3318_v12  ;;  %1407 = vmatprep.subr.mxu1 %v3319_v9  ;;  %v1566_v9 = vld [vmem:[%s3143_s0 + $0xb0] sm:$0xff] }
 0x5bf   :  { %v1048_v47 = vpop.f32.mrf.mxu0  ;;  %v1119_v12 = vpop.f32.mrf.mxu1 }
 0x5c0   :  { %v1124_v19 = vadd.f32 %v1564_v14, %v1048_v47  ;;  %v1126_v5 = vadd.f32 %v1566_v9, %v1119_v12 }
 0x5c1   :  { %v1050_v18 = vpop.f32.mrf.mxu0  ;;  %v1121_v16 = vpop.f32.mrf.mxu1 }
 0x5c2   :  { %v1568_v20 = vmul.f32 -1.442695, %v1124_v19  ;;  %v1125_v53 = vadd.f32 %v1565_v50, %v1050_v18  ;;  %v1570_v10 = vmul.f32 -1.442695, %v1126_v5  ;;  %v1127_v14 = vadd.f32 %v1567_v49, %v1121_v16 }
 0x5c4   :  { %1669 = vpow2.f32 %v1568_v20  ;;  %v1569_v2 = vmul.f32 -1.442695, %v1125_v53 }
 0x5c6   :  { %1671 = vpow2.f32 %v1569_v2 }
 0x5c7   :  { %1673 = vpow2.f32 %v1570_v10 }
 0x5d1   :  { %v1670_v7 = vpop.eup %1669 }
 0x5d2   :  { %v1137_v47 = vadd.f32 1.0, %v1670_v7 }
 0x5d3   :  { %v1672_v19 = vpop.eup %1671 }
 0x5d4   :  { %1675 = vrcp.f32 %v1137_v47  ;;  %v1138_v53 = vadd.f32 1.0, %v1672_v19  ;;  %v1674_v20 = vpop.eup %1673 }
 0x5d5   :  { %1677 = vtanh.f32 %v1127_v14  ;;  %v1139_v9 = vadd.f32 1.0, %v1674_v20  ;;  %v1582_v20 = vld [vmem:[%s3143_s0 + $0xf0] sm:$0xff] }
 0x5d6   :  { %1679 = vrcp.f32 %v1138_v53 }
 0x5d7   :  { %1681 = vrcp.f32 %v1139_v9 }
 0x5e1   :  { %v1676_v18 = vpop.eup %1675 }
 0x5e2   :  { %v1678_v50 = vpop.eup %1677 }
 0x5e3   :  { %v1680_v2 = vpop.eup %1679  ;;  %v1148_v45 = vmul.f32 %v1678_v50, %v1676_v18 }
 0x5e4   :  { %v1147_v12 = vmul.f32 %v1680_v2, %v2909_v44  ;;  %v1682_v7 = vpop.eup %1681  ;;  %v1583_v2 = vld [vmem:[%s3143_s0 + $0xf8] sm:$0xff] }
 0x5e6   :  { %v3034_v51 = vadd.f32 %v1148_v45, %v1147_v12  ;;  %v1580_v45 = vld [vmem:[%s3143_s0 + $0xe0] sm:$0xff] }
 0x5e8   :  { %1683 = vtanh.f32 %v3034_v51 }
 0x5f5   :  { %v1684_v16 = vpop.eup %1683 }
 0x5f6   :  { %v1151_v10 = vmul.f32 %v1684_v16, %v1682_v7 }
 0x5f8   :  { %1571 = vst [vmem:[%s3145_s4 + $0x28] sm:$0xff] %v1151_v10  ;;  %1224 = vmatmul.mubr.f32.vlgmr.msra.gmra.mxu0 %v1151_v10  ;;  %1295 = vmatmul.mubr.f32.vlgmr.msra.gmra.mxu1 %v1151_v10 }
 0x5f9   :  { %1337 = vmatpush1.msra.mxu0 %v2558_v56  ;;  %1408 = vmatpush1.msra.mxu1 %v2564_v55  ;;  %v3320_v56 = vld [vmem:[#allocation6_spill] sm:$0xff] }
 0x5fa   :  { %1338 = vmatprep.subr.mxu0 %v2570_v58  ;;  %1409 = vmatprep.subr.mxu1 %v2576_v61  ;;  %v3321_v55 = vld [vmem:[#allocation18_spill] sm:$0xff]  ;;  %v3322_v58 = vld [vmem:[#allocation12_spill] sm:$0xff]  ;;  %v3323_v61 = vld [vmem:[#allocation11_spill] sm:$0xff] }
 0x5fb   :  { %1339 = vmatpush1.msra.mxu0 %v2582_v46  ;;  %1410 = vmatpush1.msra.mxu1 %v2588_v57  ;;  %v3324_v46 = vld [vmem:[#allocation7_spill] sm:$0xff] }
 0x5fc   :  { %1340 = vmatprep.subr.mxu0 %v2594_v60  ;;  %1411 = vmatprep.subr.mxu1 %v2600_v48  ;;  %v3325_v57 = vld [vmem:[#allocation19_spill] sm:$0xff]  ;;  %v3326_v60 = vld [vmem:[#allocation14_spill] sm:$0xff]  ;;  %v3327_v48 = vld [vmem:[#allocation13_spill] sm:$0xff] }
 0x5fd   :  { %1341 = vmatpush1.msra.mxu0 %v2606_v52  ;;  %1412 = vmatpush1.msra.mxu1 %v2612_v54  ;;  %v3328_v52 = vld [vmem:[#allocation8_spill] sm:$0xff] }
 0x5fe   :  { %1342 = vmatprep.subr.mxu0 %v2618_v63  ;;  %1413 = vmatprep.subr.mxu1 %v2624_v3  ;;  %v3329_v54 = vld [vmem:[#allocation20_spill] sm:$0xff]  ;;  %v3331_v3 = vld [vmem:[#allocation15_spill] sm:$0xff] }
 0x5ff   :  { %1343 = vmatpush1.msra.mxu0 %v2630_v62  ;;  %1414 = vmatpush1.msra.mxu1 %v2636_v0  ;;  %v3330_v63 = vld [vmem:[#allocation16_spill] sm:$0xff]  ;;  %v3332_v62 = vld [vmem:[#allocation9_spill] sm:$0xff] }
 0x600   :  { %1344 = vmatprep.subr.mxu0 %v2642_v59  ;;  %1415 = vmatprep.subr.mxu1 %v2648_v1  ;;  %v3333_v0 = vld [vmem:[#allocation21_spill] sm:$0xff]  ;;  %v3335_v1 = vmov 0.0  }
 0x601   :  { %1345 = vmatpush1.msra.mxu0 %v2654_v4  ;;  %1416 = vmatpush1.msra.mxu1 %v2660_v6  ;;  %v3334_v59 = vld [vmem:[#allocation17_spill] sm:$0xff]  ;;  %v1572_v6 = vld [vmem:[%s3143_s0 + $0xc0] sm:$0xff] }
 0x602   :  { %1346 = vmatprep.subr.mxu0 %v2666_v8  ;;  %1417 = vmatprep.subr.mxu1 %v2672_v11  ;;  %v3336_v4 = vld [vmem:[#allocation5_spill] sm:$0xff] }
 0x603   :  { %1347 = vmatpush1.msra.mxu0 %v2678_v13  ;;  %1418 = vmatpush1.msra.mxu1 %v2684_v15  ;;  %v1573_v11 = vld [vmem:[%s3143_s0 + $0xc8] sm:$0xff] }
 0x604   :  { %1348 = vmatprep.subr.mxu0 %v2690_v17  ;;  %1419 = vmatprep.subr.mxu1 %v2696_v21 }
 0x605   :  { %1349 = vmatpush1.msra.mxu0 %v2702_v22  ;;  %1420 = vmatpush1.msra.mxu1 %v2708_v23  ;;  %v1574_v23 = vld [vmem:[%s3143_s0 + $0xd0] sm:$0xff] }
 0x606   :  { %1350 = vmatprep.subr.mxu0 %v2714_v24  ;;  %1421 = vmatprep.subr.mxu1 %v2720_v25 }
 0x607   :  { %1351 = vmatpush1.msra.mxu0 %v2726_v26  ;;  %1422 = vmatpush1.msra.mxu1 %v2732_v27  ;;  %v1575_v26 = vld [vmem:[%s3143_s0 + $0xd8] sm:$0xff] }
 0x608   :  { %1352 = vmatprep.subr.mxu0 %v2738_v28  ;;  %1423 = vmatprep.subr.mxu1 %v2744_v29 }
 0x609   :  { %1353 = vmatpush1.msra.mxu0 %v2750_v30  ;;  %1424 = vmatpush1.msra.mxu1 %v2756_v31 }
 0x60a   :  { %1354 = vmatprep.subr.mxu0 %v2762_v32  ;;  %1425 = vmatprep.subr.mxu1 %v2768_v33 }
 0x60b   :  { %1355 = vmatpush1.msra.mxu0 %v2774_v34  ;;  %1426 = vmatpush1.msra.mxu1 %v2780_v35 }
 0x60c   :  { %1356 = vmatprep.subr.mxu0 %v2786_v36  ;;  %1427 = vmatprep.subr.mxu1 %v2792_v37 }
 0x60d   :  { %1357 = vmatpush1.msra.mxu0 %v2798_v38  ;;  %1428 = vmatpush1.msra.mxu1 %v2804_v39 }
 0x60e   :  { %1358 = vmatprep.subr.mxu0 %v2810_v40  ;;  %1429 = vmatprep.subr.mxu1 %v2816_v41 }
 0x60f   :  { %1359 = vmatpush1.msra.mxu0 %v2822_v42  ;;  %1430 = vmatpush1.msra.mxu1 %v2828_v43 }
 0x610   :  { %1360 = vmatprep.subr.mxu0 %v3320_v56  ;;  %1431 = vmatprep.subr.mxu1 %v3321_v55 }
 0x611   :  { %1361 = vmatpush1.msra.mxu0 %v3322_v58  ;;  %1432 = vmatpush1.msra.mxu1 %v3323_v61 }
 0x612   :  { %1362 = vmatprep.subr.mxu0 %v3324_v46  ;;  %1433 = vmatprep.subr.mxu1 %v3325_v57 }
 0x613   :  { %1363 = vmatpush1.msra.mxu0 %v3326_v60  ;;  %1434 = vmatpush1.msra.mxu1 %v3327_v48 }
 0x614   :  { %1364 = vmatprep.subr.mxu0 %v3328_v52  ;;  %1435 = vmatprep.subr.mxu1 %v3329_v54 }
 0x615   :  { %1365 = vmatpush1.msra.mxu0 %v3330_v63  ;;  %1436 = vmatpush1.msra.mxu1 %v3331_v3 }
 0x616   :  { %1366 = vmatprep.subr.mxu0 %v3332_v62  ;;  %1437 = vmatprep.subr.mxu1 %v3333_v0 }
 0x617   :  { %1367 = vmatpush1.msra.mxu0 %v3334_v59  ;;  %1400 = vmatprep.mubr.f32.mxu0 %v3335_v1 }
 0x618   :  { %1438 = vmatpush1.msra.mxu1 %v3336_v4  ;;  %1471 = vmatprep.mubr.f32.mxu1 %v3335_v1 }
 0x6b8   :  { %v1225_v8 = vpop.f32.mrf.mxu0  ;;  %v1296_v24 = vpop.f32.mrf.mxu1 }
 0x6b9   :  { %v1301_v13 = vadd.f32 %v1572_v6, %v1225_v8  ;;  %v1303_v25 = vadd.f32 %v1574_v23, %v1296_v24 }
 0x6ba   :  { %v1227_v15 = vpop.f32.mrf.mxu0  ;;  %v1298_v27 = vpop.f32.mrf.mxu1 }
 0x6bb   :  { %v1576_v17 = vmul.f32 -1.442695, %v1301_v13  ;;  %v1302_v21 = vadd.f32 %v1573_v11, %v1227_v15  ;;  %v1578_v28 = vmul.f32 -1.442695, %v1303_v25  ;;  %v1304_v30 = vadd.f32 %v1575_v26, %v1298_v27 }
 0x6bd   :  { %1685 = vpow2.f32 %v1576_v17  ;;  %v1577_v22 = vmul.f32 -1.442695, %v1302_v21 }
 0x6bf   :  { %1687 = vpow2.f32 %v1577_v22 }
 0x6c0   :  { %1689 = vpow2.f32 %v1578_v28 }
 0x6ca   :  { %v1686_v29 = vpop.eup %1685 }
 0x6cb   :  { %v1314_v31 = vadd.f32 1.0, %v1686_v29 }
 0x6cc   :  { %v1688_v32 = vpop.eup %1687 }
 0x6cd   :  { %1691 = vrcp.f32 %v1314_v31  ;;  %v1315_v33 = vadd.f32 1.0, %v1688_v32  ;;  %v1690_v34 = vpop.eup %1689 }
 0x6ce   :  { %1693 = vtanh.f32 %v1304_v30  ;;  %v1316_v38 = vadd.f32 1.0, %v1690_v34 }
 0x6cf   :  { %1695 = vrcp.f32 %v1315_v33 }
 0x6d0   :  { %1697 = vrcp.f32 %v1316_v38 }
 0x6da   :  { %v1692_v35 = vpop.eup %1691 }
 0x6db   :  { %v1694_v36 = vpop.eup %1693 }
 0x6dc   :  { %v1696_v37 = vpop.eup %1695  ;;  %v1325_v40 = vmul.f32 %v1694_v36, %v1692_v35 }
 0x6dd   :  { %v1324_v39 = vmul.f32 %v1696_v37, %v3034_v51  ;;  %v1698_v42 = vpop.eup %1697  ;;  %v1581_v51 = vld [vmem:[%s3143_s0 + $0xe8] sm:$0xff] }
 0x6df   :  { %v1326_v41 = vadd.f32 %v1325_v40, %v1324_v39 }
 0x6e1   :  { %1699 = vtanh.f32 %v1326_v41 }
 0x6ee   :  { %v1700_v43 = vpop.eup %1699 }
 0x6ef   :  { %v1328_v44 = vmul.f32 %v1700_v43, %v1698_v42 }
 0x6f1   :  { %1579 = vst [vmem:[%s3145_s4 + $0x30] sm:$0xff] %v1328_v44  ;;  %1401 = vmatmul.mubr.f32.vlgmr.msra.gmra.mxu0 %v1328_v44  ;;  %1472 = vmatmul.mubr.f32.vlgmr.msra.gmra.mxu1 %v1328_v44 }
 0x7b1   :  { %v1402_v49 = vpop.f32.mrf.mxu0  ;;  %v1473_v18 = vpop.f32.mrf.mxu1 }
 0x7b2   :  { %v1478_v5 = vadd.f32 %v1580_v45, %v1402_v49  ;;  %v1480_v50 = vadd.f32 %v1582_v20, %v1473_v18 }
 0x7b3   :  { %v1404_v14 = vpop.f32.mrf.mxu0  ;;  %v1475_v9 = vpop.f32.mrf.mxu1 }
 0x7b4   :  { %v1584_v47 = vmul.f32 -1.442695, %v1478_v5  ;;  %v1479_v19 = vadd.f32 %v1581_v51, %v1404_v14  ;;  %v1586_v12 = vmul.f32 -1.442695, %v1480_v50  ;;  %v1481_v16 = vadd.f32 %v1583_v2, %v1475_v9 }
 0x7b6   :  { %1701 = vpow2.f32 %v1584_v47  ;;  %v1585_v53 = vmul.f32 -1.442695, %v1479_v19 }
 0x7b8   :  { %1703 = vpow2.f32 %v1585_v53 }
 0x7b9   :  { %1705 = vpow2.f32 %v1586_v12 }
 0x7c3   :  { %v1702_v7 = vpop.eup %1701 }
 0x7c4   :  { %v1491_v10 = vadd.f32 1.0, %v1702_v7 }
 0x7c5   :  { %v1704_v56 = vpop.eup %1703 }
 0x7c6   :  { %1707 = vrcp.f32 %v1491_v10  ;;  %v1492_v55 = vadd.f32 1.0, %v1704_v56  ;;  %v1706_v58 = vpop.eup %1705 }
 0x7c7   :  { %1709 = vtanh.f32 %v1481_v16  ;;  %v1493_v60 = vadd.f32 1.0, %v1706_v58 }
 0x7c8   :  { %1711 = vrcp.f32 %v1492_v55 }
 0x7c9   :  { %1713 = vrcp.f32 %v1493_v60 }
 0x7d3   :  { %v1708_v61 = vpop.eup %1707 }
 0x7d4   :  { %v1710_v46 = vpop.eup %1709 }
 0x7d5   :  { %v1712_v57 = vpop.eup %1711  ;;  %v1502_v52 = vmul.f32 %v1710_v46, %v1708_v61 }
 0x7d6   :  { %v1501_v48 = vmul.f32 %v1712_v57, %v1326_v41  ;;  %v1714_v63 = vpop.eup %1713 }
 0x7d8   :  { %v1503_v54 = vadd.f32 %v1502_v52, %v1501_v48 }
 0x7da   :  { %1715 = vtanh.f32 %v1503_v54  ;;  %1516 = vst [vmem:[%s3146_s6] sm:$0xff] %v1503_v54 }
 0x7e7   :  { %v1716_v3 = vpop.eup %1715 }
 0x7e8   :  { %v1505_v62 = vmul.f32 %v1716_v3, %v1714_v63 }
 0x7ea   :  { %1587 = vst [vmem:[%s3145_s4 + $0x38] sm:$0xff] %v1505_v62  ;;  %1514 = vst [vmem:[%s3147_s5] sm:$0xff] %v1505_v62 }

</bundles_post_ra>
